<compile_context>
chip_gen: v7x
topology: tpu7x:2x2x1
jax: 0.10.0
libtpu: 0.0.40
codegen_flags: <defaults>
</compile_context>

<pallas_src>
import jax
import jax.numpy as jnp
from jax.experimental import pallas as pl
from jax.experimental.pallas import tpu as pltpu


# ---------------------------------------------------------------------------
# Attention block kernel (one grid step = TB batch examples)
# ---------------------------------------------------------------------------
def _attention_kernel(vi_ref, hq_ref, w_img_ref, w_p_ref, out_ref):
    TB, R, D = vi_ref.shape
    K = w_img_ref.shape[1]

    vi = vi_ref[...]                                      # (TB, R, D), bf16
    # h_i = v_i @ W_img : single MXU call over all TB*R rows, f32 accumulation.
    h_i = jnp.dot(vi.reshape(TB * R, D), w_img_ref[...],
                  preferred_element_type=jnp.float32).reshape(TB, R, K)
    # h_a = tanh(h_i + h_q); h_q was precomputed in the wrapper (f32).
    h_a = jnp.tanh(h_i + hq_ref[...])                     # (TB, R, K)

    # logits = h_a @ w_p done as elementwise mul + lane reduction (avoids an
    # N=1 MXU matmul).  b_p omitted: softmax is invariant to a constant shift.
    logits = jnp.sum(h_a * w_p_ref[...].reshape(1, 1, K),
                     axis=-1, keepdims=True)              # (TB, R, 1)

    # softmax over the region axis
    m = jnp.max(logits, axis=1, keepdims=True)
    e = jnp.exp(logits - m)
    p = e * pl.reciprocal(jnp.sum(e, axis=1, keepdims=True), approx=True)

    # attention-weighted sum of regions, in f32
    out = jnp.sum(vi.astype(jnp.float32) * p, axis=1, keepdims=True)  # (TB,1,D)
    out_ref[...] = out.astype(out_ref.dtype)


def _pick_tb(batch, regions, feat, itemsize,
             target_rows=256, vmem_budget_bytes=8 * 1024 * 1024):
    """Pick the batch tile TB: smallest divisor of `batch` reaching
    TB*R >= target_rows, subject to the double-buffered v_i block fitting a
    conservative VMEM budget, and keeping >= 2 grid steps so the batch axis
    can shard across the 2 TensorCores on v7x."""
    cap = batch if batch == 1 else max(1, batch // 2)
    tb = 1
    for cand in range(1, cap + 1):
        if batch % cand:
            continue
        if 2 * cand * regions * feat * itemsize > vmem_budget_bytes:
            break
        tb = cand
        if cand * regions >= target_rows:
            break
    return tb


def attention_block(v_i, h_q, w_img, w_p_row):
    """v_i: (B, R, D) (bf16 or f32), h_q: (B, 1, K) f32 (already = v_q@W_q+b_q),
    w_img: (D, K) same dtype as v_i, w_p_row: (1, K) f32.  Returns (B, D) f32."""
    B, R, D = v_i.shape
    K = w_img.shape[1]
    TB = _pick_tb(B, R, D, v_i.dtype.itemsize)
    grid = B // TB

    out = pl.pallas_call(
        _attention_kernel,
        out_shape=jax.ShapeDtypeStruct((B, 1, D), jnp.float32),
        grid_spec=pltpu.PrefetchScalarGridSpec(
            num_scalar_prefetch=0,
            grid=(grid,),
            in_specs=[
                pl.BlockSpec((TB, R, D), lambda b: (b, 0, 0)),  # v_i (batch tile)
                pl.BlockSpec((TB, 1, K), lambda b: (b, 0, 0)),  # h_q (batch tile)
                pl.BlockSpec((D, K),     lambda b: (0, 0)),     # W_img (shared)
                pl.BlockSpec((1, K),     lambda b: (0, 0)),     # w_p row (shared)
            ],
            out_specs=pl.BlockSpec((TB, 1, D), lambda b: (b, 0, 0)),
        ),
        compiler_params=pltpu.CompilerParams(
            dimension_semantics=("parallel",)),
    )(v_i, h_q, w_img, w_p_row)
    return out.reshape(B, D)


# ---------------------------------------------------------------------------
# Classifier head kernel: prediction = (v_2 + v_q) @ W_op + b_op
# ---------------------------------------------------------------------------
def _head_kernel(v2_ref, vq_ref, w_ref, b_ref, out_ref):
    u = v2_ref[...] + vq_ref[...]
    out_ref[...] = (jnp.dot(u, w_ref[...], preferred_element_type=jnp.float32)
                    + b_ref[...]).astype(out_ref.dtype)


def classifier_head(v_2, v_q, w_op, b_op):
    B, D = v_2.shape
    C = w_op.shape[1]
    return pl.pallas_call(
        _head_kernel,
        out_shape=jax.ShapeDtypeStruct((B, C), jnp.float32),
        grid_spec=pltpu.PrefetchScalarGridSpec(
            num_scalar_prefetch=0,
            grid=(1,),
            in_specs=[
                pl.BlockSpec((B, D), lambda i: (0, 0)),
                pl.BlockSpec((B, D), lambda i: (0, 0)),
                pl.BlockSpec((D, C), lambda i: (0, 0)),
                pl.BlockSpec((1, C), lambda i: (0, 0)),
            ],
            out_specs=pl.BlockSpec((B, C), lambda i: (0, 0)),
        ),
    )(v_2, v_q, w_op, b_op.reshape(1, C))


# ---------------------------------------------------------------------------
# Full StackedAttention forward
# ---------------------------------------------------------------------------
@jax.jit
def stacked_attention_forward(img_f, v_q, p):
    # TODO(synk): conv1 (3x3, pad 1) + ReLU left in XLA (lax.conv); it is a
    # standard dense conv and not the attention hot path targeted here.
    x = jax.lax.conv_general_dilated(
        img_f, p["w_conv"], (1, 1), "SAME",
        dimension_numbers=("NCHW", "OIHW", "NCHW"))
    x = jnp.maximum(x + p["b_conv"][None, :, None, None], 0.0)
    B, D, H, W = x.shape
    v_i = jnp.transpose(x.reshape(B, D, H * W), (0, 2, 1))     # (B, R, D)

    # ---- attention block 1 ----
    hq1 = (v_q @ p["w_q1"] + p["b_q1"])[:, None, :]            # (B, 1, K), f32
    v_1 = attention_block(v_i.astype(jnp.bfloat16), hq1,
                          p["w_img1"].astype(jnp.bfloat16),
                          p["w_p1"].reshape(1, -1))            # (B, D) f32

    # ---- attention block 2 ----
    # PyTorch broadcast semantics: v_1 (2-D) is a *shared* region set of size B
    # attended by every query u1[i] = v_1[i] + v_q[i].
    u1 = v_1 + v_q
    hq2 = (u1 @ p["w_q2"] + p["b_q2"])[:, None, :]
    vi2 = jnp.broadcast_to(v_1[None, :, :], (B, B, D))
    v_2 = attention_block(vi2.astype(jnp.bfloat16), hq2,
                          p["w_img2"].astype(jnp.bfloat16),
                          p["w_p2"].reshape(1, -1))            # (B, D) f32

    # ---- classifier head ----
    return classifier_head(v_2, v_q, p["w_op"], p["b_op"])


# ---------------------------------------------------------------------------
# Pure-JAX f32 reference (literal translation of the PyTorch forward)
# ---------------------------------------------------------------------------
def _reference_forward(img_f, v_q, p):
    x = jax.lax.conv_general_dilated(
        img_f, p["w_conv"], (1, 1), "SAME",
        dimension_numbers=("NCHW", "OIHW", "NCHW"))
    x = jnp.maximum(x + p["b_conv"][None, :, None, None], 0.0)
    B, D, H, W = x.shape
    v_i = x.reshape(B, D, H * W)                 # (B, D, R)
    vq3 = v_q[:, :, None]                        # (B, D, 1)

    def att(v_i_, v_q_, wi, wq, bq, wp, bp):
        h_q = v_q_ @ wq + bq
        h_i = v_i_ @ wi
        h_a = jnp.tanh(h_i + h_q)                # numpy broadcasting == torch
        p_a = jax.nn.softmax(h_a @ wp + bp, axis=1)
        return jnp.sum(v_i_ * p_a, axis=1)

    v_1 = att(jnp.transpose(v_i, (0, 2, 1)), jnp.transpose(vq3, (0, 2, 1)),
              p["w_img1"], p["w_q1"], p["b_q1"], p["w_p1"], p["b_p1"])
    v_2 = att(v_1, jnp.transpose(v_1[:, :, None] + vq3, (0, 2, 1)),
              p["w_img2"], p["w_q2"], p["b_q2"], p["w_p2"], p["b_p2"])
    u = v_2 + v_q
    return u @ p["w_op"] + p["b_op"]


if __name__ == "__main__":
    key = jax.random.PRNGKey(0)
    ks = jax.random.split(key, 16)

    # Small demo config (module dims 2048/3001/k=120 shrunk; K picked lane-dense
    # per the perf review since k is a tunable hyperparameter).
    B, C_IN, H, W = 4, 128, 4, 4          # R = H*W = 16 regions
    D, K, NUM_CLASSES = 1024, 128, 256

    def rnd(k_, shape, scale=1.0):
        return jax.random.normal(k_, shape, jnp.float32) * scale

    img_f = rnd(ks[0], (B, C_IN, H, W))
    v_q = rnd(ks[1], (B, D))

    params = dict(
        w_conv=rnd(ks[2], (D, C_IN, 3, 3), 0.02),
        b_conv=rnd(ks[3], (D,), 0.02),
        w_img1=rnd(ks[4], (D, K), 0.02),
        w_q1=rnd(ks[5], (D, K), 0.02),
        b_q1=rnd(ks[6], (K,), 0.02),
        w_p1=rnd(ks[7], (K, 1), 0.02),
        b_p1=rnd(ks[8], (1,), 0.02),
        w_img2=rnd(ks[9], (D, K), 0.02),
        w_q2=rnd(ks[10], (D, K), 0.02),
        b_q2=rnd(ks[11], (K,), 0.02),
        w_p2=rnd(ks[12], (K, 1), 0.02),
        b_p2=rnd(ks[13], (1,), 0.02),
        w_op=rnd(ks[14], (D, NUM_CLASSES), 0.02),
        b_op=rnd(ks[15], (NUM_CLASSES,), 0.02),
    )

    out = stacked_attention_forward(img_f, v_q, params)
    out = jax.block_until_ready(out)

    ref = _reference_forward(img_f, v_q, params)
    assert out.shape == (B, NUM_CLASSES)
    max_err = float(jnp.max(jnp.abs(out - ref)))
    # bf16 matmul operands + approx reciprocal -> loosened tolerance vs f32 ref.
    assert jnp.allclose(out, ref, atol=3e-2, rtol=3e-2), (
        f"mismatch vs reference, max abs err {max_err}")

    print("KERNEL_OK")
</pallas_src>

<mosaic_0001>
module attributes {stable_mosaic.version = 11 : i64} {
  func.func @_attention_kernel(%arg0: i32, %arg1: memref<2x16x1024xbf16, #tpu.memory_space<vmem>>, %arg2: memref<2x1x128xf32, #tpu.memory_space<vmem>>, %arg3: memref<1024x128xbf16, #tpu.memory_space<vmem>>, %arg4: memref<1x128xf32, #tpu.memory_space<vmem>>, %arg5: memref<2x1x1024xf32, #tpu.memory_space<vmem>>) attributes {dimension_semantics = [#tpu.dimension_semantics<parallel>], iteration_bounds = array<i64: 2>, scalar_prefetch = 0 : i64, scratch_operands = 0 : i64, tpu.core_type = #tpu.core_type<tc>, window_params = [{transform_indices = @transform_0, window_bounds = array<i64: 2, 16, 1024>}, {transform_indices = @transform_1, window_bounds = array<i64: 2, 1, 128>}, {pipeline_mode = #tpu.pipeline_mode<synchronous>, transform_indices = @transform_2, window_bounds = array<i64: 1024, 128>}, {pipeline_mode = #tpu.pipeline_mode<synchronous>, transform_indices = @transform_3, window_bounds = array<i64: 1, 128>}, {transform_indices = @transform_4, window_bounds = array<i64: 2, 1, 1024>}]} {
    %c0 = arith.constant 0 : index
    %c0_0 = arith.constant 0 : index
    %c0_1 = arith.constant 0 : index
    %0 = vector.load %arg1[%c0, %c0_0, %c0_1] : memref<2x16x1024xbf16, #tpu.memory_space<vmem>>, vector<2x16x1024xbf16>
    %1 = vector.shape_cast %0 : vector<2x16x1024xbf16> to vector<32x1024xbf16>
    %c0_2 = arith.constant 0 : index
    %c0_3 = arith.constant 0 : index
    %2 = vector.load %arg3[%c0_2, %c0_3] : memref<1024x128xbf16, #tpu.memory_space<vmem>>, vector<1024x128xbf16>
    %cst = arith.constant dense<0.000000e+00> : vector<32x128xf32>
    %3 = tpu.matmul %1, %2, %cst {dimension_numbers = #tpu.dot_dimension_numbers<[1], [0], [0], [1], [0, 0, 1, 1], [], []>} : vector<32x1024xbf16>, vector<1024x128xbf16>, vector<32x128xf32> -> vector<32x128xf32>
    %4 = vector.shape_cast %3 : vector<32x128xf32> to vector<2x16x128xf32>
    %c0_4 = arith.constant 0 : index
    %c0_5 = arith.constant 0 : index
    %c0_6 = arith.constant 0 : index
    %5 = vector.load %arg2[%c0_4, %c0_5, %c0_6] : memref<2x1x128xf32, #tpu.memory_space<vmem>>, vector<2x1x128xf32>
    %6 = vector.broadcast %5 : vector<2x1x128xf32> to vector<2x16x128xf32>
    %7 = arith.addf %4, %6 : vector<2x16x128xf32>
    %8 = math.tanh %7 : vector<2x16x128xf32>
    %c0_7 = arith.constant 0 : index
    %c0_8 = arith.constant 0 : index
    %9 = vector.load %arg4[%c0_7, %c0_8] : memref<1x128xf32, #tpu.memory_space<vmem>>, vector<1x128xf32>
    %10 = vector.shape_cast %9 : vector<1x128xf32> to vector<1x1x128xf32>
    %11 = vector.broadcast %10 : vector<1x1x128xf32> to vector<2x16x128xf32>
    %12 = arith.mulf %8, %11 : vector<2x16x128xf32>
    %cst_9 = arith.constant dense<0.000000e+00> : vector<2x16xf32>
    %13 = vector.multi_reduction <add>, %12, %cst_9 [2] : vector<2x16x128xf32> to vector<2x16xf32>
    %14 = vector.shape_cast %13 : vector<2x16xf32> to vector<2x16x1xf32>
    %cst_10 = arith.constant dense<0xFF800000> : vector<2x1xf32>
    %15 = vector.multi_reduction <maximumf>, %14, %cst_10 [1] : vector<2x16x1xf32> to vector<2x1xf32>
    %16 = vector.shape_cast %15 : vector<2x1xf32> to vector<2x1x1xf32>
    %17 = vector.broadcast %16 : vector<2x1x1xf32> to vector<2x16x1xf32>
    %18 = arith.subf %14, %17 : vector<2x16x1xf32>
    %19 = math.exp %18 : vector<2x16x1xf32>
    %cst_11 = arith.constant dense<0.000000e+00> : vector<2x1xf32>
    %20 = vector.multi_reduction <add>, %19, %cst_11 [1] : vector<2x16x1xf32> to vector<2x1xf32>
    %21 = vector.shape_cast %20 : vector<2x1xf32> to vector<2x1x1xf32>
    %22 = tpu.reciprocal %21 {approx = true} : vector<2x1x1xf32> -> vector<2x1x1xf32>
    %23 = vector.broadcast %22 : vector<2x1x1xf32> to vector<2x16x1xf32>
    %24 = arith.mulf %19, %23 : vector<2x16x1xf32>
    %25 = arith.extf %0 : vector<2x16x1024xbf16> to vector<2x16x1024xf32>
    %26 = vector.broadcast %24 : vector<2x16x1xf32> to vector<2x16x1024xf32>
    %27 = arith.mulf %25, %26 : vector<2x16x1024xf32>
    %cst_12 = arith.constant dense<0.000000e+00> : vector<2x1024xf32>
    %28 = vector.multi_reduction <add>, %27, %cst_12 [1] : vector<2x16x1024xf32> to vector<2x1024xf32>
    %29 = vector.shape_cast %28 : vector<2x1024xf32> to vector<2x1x1024xf32>
    %c0_13 = arith.constant 0 : index
    %c0_14 = arith.constant 0 : index
    %c0_15 = arith.constant 0 : index
    %30 = vector.load %arg5[%c0_13, %c0_14, %c0_15] : memref<2x1x1024xf32, #tpu.memory_space<vmem>>, vector<2x1x1024xf32>
    tpu.vector_store %arg5[%c0_13, %c0_14, %c0_15], %29 {strides = array<i32>} : memref<2x1x1024xf32, #tpu.memory_space<vmem>>, vector<2x1x1024xf32>,
    return
  }
  func.func @transform_0(%arg0: i32) -> (i32, i32, i32) {
    %c0_i32 = arith.constant 0 : i32
    %c0_i32_0 = arith.constant 0 : i32
    %c0_i32_1 = arith.constant 0 : i32
    return %arg0, %c0_i32, %c0_i32_0 : i32, i32, i32
  }
  func.func @transform_1(%arg0: i32) -> (i32, i32, i32) {
    %c0_i32 = arith.constant 0 : i32
    %c0_i32_0 = arith.constant 0 : i32
    %c0_i32_1 = arith.constant 0 : i32
    return %arg0, %c0_i32, %c0_i32_0 : i32, i32, i32
  }
  func.func @transform_2(%arg0: i32) -> (i32, i32) {
    %c0_i32 = arith.constant 0 : i32
    %c0_i32_0 = arith.constant 0 : i32
    %c0_i32_1 = arith.constant 0 : i32
    return %c0_i32, %c0_i32_0 : i32, i32
  }
  func.func @transform_3(%arg0: i32) -> (i32, i32) {
    %c0_i32 = arith.constant 0 : i32
    %c0_i32_0 = arith.constant 0 : i32
    %c0_i32_1 = arith.constant 0 : i32
    return %c0_i32, %c0_i32_0 : i32, i32
  }
  func.func @transform_4(%arg0: i32) -> (i32, i32, i32) {
    %c0_i32 = arith.constant 0 : i32
    %c0_i32_0 = arith.constant 0 : i32
    %c0_i32_1 = arith.constant 0 : i32
    return %arg0, %c0_i32, %c0_i32_0 : i32, i32, i32
  }
}

module attributes {stable_mosaic.version = 11 : i64} {
  func.func @_head_kernel(%arg0: i32, %arg1: memref<4x1024xf32, #tpu.memory_space<vmem>>, %arg2: memref<4x1024xf32, #tpu.memory_space<vmem>>, %arg3: memref<1024x256xf32, #tpu.memory_space<vmem>>, %arg4: memref<1x256xf32, #tpu.memory_space<vmem>>, %arg5: memref<4x256xf32, #tpu.memory_space<vmem>>) attributes {dimension_semantics = [#tpu.dimension_semantics<arbitrary>], iteration_bounds = array<i64: 1>, scalar_prefetch = 0 : i64, scratch_operands = 0 : i64, tpu.core_type = #tpu.core_type<tc>, window_params = [{pipeline_mode = #tpu.pipeline_mode<synchronous>, transform_indices = @transform_0, window_bounds = array<i64: 4, 1024>}, {pipeline_mode = #tpu.pipeline_mode<synchronous>, transform_indices = @transform_1, window_bounds = array<i64: 4, 1024>}, {pipeline_mode = #tpu.pipeline_mode<synchronous>, transform_indices = @transform_2, window_bounds = array<i64: 1024, 256>}, {pipeline_mode = #tpu.pipeline_mode<synchronous>, transform_indices = @transform_3, window_bounds = array<i64: 1, 256>}, {pipeline_mode = #tpu.pipeline_mode<synchronous>, transform_indices = @transform_4, window_bounds = array<i64: 4, 256>}]} {
    %c0 = arith.constant 0 : index
    %c0_0 = arith.constant 0 : index
    %0 = vector.load %arg1[%c0, %c0_0] : memref<4x1024xf32, #tpu.memory_space<vmem>>, vector<4x1024xf32>
    %c0_1 = arith.constant 0 : index
    %c0_2 = arith.constant 0 : index
    %1 = vector.load %arg2[%c0_1, %c0_2] : memref<4x1024xf32, #tpu.memory_space<vmem>>, vector<4x1024xf32>
    %2 = arith.addf %0, %1 : vector<4x1024xf32>
    %c0_3 = arith.constant 0 : index
    %c0_4 = arith.constant 0 : index
    %3 = vector.load %arg3[%c0_3, %c0_4] : memref<1024x256xf32, #tpu.memory_space<vmem>>, vector<1024x256xf32>
    %cst = arith.constant dense<0.000000e+00> : vector<4x256xf32>
    %4 = tpu.matmul %2, %3, %cst {dimension_numbers = #tpu.dot_dimension_numbers<[1], [0], [0], [1], [0, 0, 1, 1], [], []>} : vector<4x1024xf32>, vector<1024x256xf32>, vector<4x256xf32> -> vector<4x256xf32>
    %c0_5 = arith.constant 0 : index
    %c0_6 = arith.constant 0 : index
    %5 = vector.load %arg4[%c0_5, %c0_6] : memref<1x256xf32, #tpu.memory_space<vmem>>, vector<1x256xf32>
    %6 = vector.broadcast %5 : vector<1x256xf32> to vector<4x256xf32>
    %7 = arith.addf %4, %6 : vector<4x256xf32>
    %c0_7 = arith.constant 0 : index
    %c0_8 = arith.constant 0 : index
    %8 = vector.load %arg5[%c0_7, %c0_8] : memref<4x256xf32, #tpu.memory_space<vmem>>, vector<4x256xf32>
    tpu.vector_store %arg5[%c0_7, %c0_8], %7 {strides = array<i32>} : memref<4x256xf32, #tpu.memory_space<vmem>>, vector<4x256xf32>,
    return
  }
  func.func @transform_0(%arg0: i32) -> (i32, i32) {
    %c0_i32 = arith.constant 0 : i32
    %c0_i32_0 = arith.constant 0 : i32
    %c0_i32_1 = arith.constant 0 : i32
    return %c0_i32, %c0_i32_0 : i32, i32
  }
  func.func @transform_1(%arg0: i32) -> (i32, i32) {
    %c0_i32 = arith.constant 0 : i32
    %c0_i32_0 = arith.constant 0 : i32
    %c0_i32_1 = arith.constant 0 : i32
    return %c0_i32, %c0_i32_0 : i32, i32
  }
  func.func @transform_2(%arg0: i32) -> (i32, i32) {
    %c0_i32 = arith.constant 0 : i32
    %c0_i32_0 = arith.constant 0 : i32
    %c0_i32_1 = arith.constant 0 : i32
    return %c0_i32, %c0_i32_0 : i32, i32
  }
  func.func @transform_3(%arg0: i32) -> (i32, i32) {
    %c0_i32 = arith.constant 0 : i32
    %c0_i32_0 = arith.constant 0 : i32
    %c0_i32_1 = arith.constant 0 : i32
    return %c0_i32, %c0_i32_0 : i32, i32
  }
  func.func @transform_4(%arg0: i32) -> (i32, i32) {
    %c0_i32 = arith.constant 0 : i32
    %c0_i32_0 = arith.constant 0 : i32
    %c0_i32_1 = arith.constant 0 : i32
    return %c0_i32, %c0_i32_0 : i32, i32
  }
}

module attributes {stable_mosaic.version = 11 : i64} {
  func.func @_attention_kernel(%arg0: i32, %arg1: memref<2x4x1024xbf16, #tpu.memory_space<vmem>>, %arg2: memref<2x1x128xf32, #tpu.memory_space<vmem>>, %arg3: memref<1024x128xbf16, #tpu.memory_space<vmem>>, %arg4: memref<1x128xf32, #tpu.memory_space<vmem>>, %arg5: memref<2x1x1024xf32, #tpu.memory_space<vmem>>) attributes {dimension_semantics = [#tpu.dimension_semantics<parallel>], iteration_bounds = array<i64: 2>, scalar_prefetch = 0 : i64, scratch_operands = 0 : i64, tpu.core_type = #tpu.core_type<tc>, window_params = [{transform_indices = @transform_0, window_bounds = array<i64: 2, 4, 1024>}, {transform_indices = @transform_1, window_bounds = array<i64: 2, 1, 128>}, {pipeline_mode = #tpu.pipeline_mode<synchronous>, transform_indices = @transform_2, window_bounds = array<i64: 1024, 128>}, {pipeline_mode = #tpu.pipeline_mode<synchronous>, transform_indices = @transform_3, window_bounds = array<i64: 1, 128>}, {transform_indices = @transform_4, window_bounds = array<i64: 2, 1, 1024>}]} {
    %c0 = arith.constant 0 : index
    %c0_0 = arith.constant 0 : index
    %c0_1 = arith.constant 0 : index
    %0 = vector.load %arg1[%c0, %c0_0, %c0_1] : memref<2x4x1024xbf16, #tpu.memory_space<vmem>>, vector<2x4x1024xbf16>
    %1 = vector.shape_cast %0 : vector<2x4x1024xbf16> to vector<8x1024xbf16>
    %c0_2 = arith.constant 0 : index
    %c0_3 = arith.constant 0 : index
    %2 = vector.load %arg3[%c0_2, %c0_3] : memref<1024x128xbf16, #tpu.memory_space<vmem>>, vector<1024x128xbf16>
    %cst = arith.constant dense<0.000000e+00> : vector<8x128xf32>
    %3 = tpu.matmul %1, %2, %cst {dimension_numbers = #tpu.dot_dimension_numbers<[1], [0], [0], [1], [0, 0, 1, 1], [], []>} : vector<8x1024xbf16>, vector<1024x128xbf16>, vector<8x128xf32> -> vector<8x128xf32>
    %4 = vector.shape_cast %3 : vector<8x128xf32> to vector<2x4x128xf32>
    %c0_4 = arith.constant 0 : index
    %c0_5 = arith.constant 0 : index
    %c0_6 = arith.constant 0 : index
    %5 = vector.load %arg2[%c0_4, %c0_5, %c0_6] : memref<2x1x128xf32, #tpu.memory_space<vmem>>, vector<2x1x128xf32>
    %6 = vector.broadcast %5 : vector<2x1x128xf32> to vector<2x4x128xf32>
    %7 = arith.addf %4, %6 : vector<2x4x128xf32>
    %8 = math.tanh %7 : vector<2x4x128xf32>
    %c0_7 = arith.constant 0 : index
    %c0_8 = arith.constant 0 : index
    %9 = vector.load %arg4[%c0_7, %c0_8] : memref<1x128xf32, #tpu.memory_space<vmem>>, vector<1x128xf32>
    %10 = vector.shape_cast %9 : vector<1x128xf32> to vector<1x1x128xf32>
    %11 = vector.broadcast %10 : vector<1x1x128xf32> to vector<2x4x128xf32>
    %12 = arith.mulf %8, %11 : vector<2x4x128xf32>
    %cst_9 = arith.constant dense<0.000000e+00> : vector<2x4xf32>
    %13 = vector.multi_reduction <add>, %12, %cst_9 [2] : vector<2x4x128xf32> to vector<2x4xf32>
    %14 = vector.shape_cast %13 : vector<2x4xf32> to vector<2x4x1xf32>
    %cst_10 = arith.constant dense<0xFF800000> : vector<2x1xf32>
    %15 = vector.multi_reduction <maximumf>, %14, %cst_10 [1] : vector<2x4x1xf32> to vector<2x1xf32>
    %16 = vector.shape_cast %15 : vector<2x1xf32> to vector<2x1x1xf32>
    %17 = vector.broadcast %16 : vector<2x1x1xf32> to vector<2x4x1xf32>
    %18 = arith.subf %14, %17 : vector<2x4x1xf32>
    %19 = math.exp %18 : vector<2x4x1xf32>
    %cst_11 = arith.constant dense<0.000000e+00> : vector<2x1xf32>
    %20 = vector.multi_reduction <add>, %19, %cst_11 [1] : vector<2x4x1xf32> to vector<2x1xf32>
    %21 = vector.shape_cast %20 : vector<2x1xf32> to vector<2x1x1xf32>
    %22 = tpu.reciprocal %21 {approx = true} : vector<2x1x1xf32> -> vector<2x1x1xf32>
    %23 = vector.broadcast %22 : vector<2x1x1xf32> to vector<2x4x1xf32>
    %24 = arith.mulf %19, %23 : vector<2x4x1xf32>
    %25 = arith.extf %0 : vector<2x4x1024xbf16> to vector<2x4x1024xf32>
    %26 = vector.broadcast %24 : vector<2x4x1xf32> to vector<2x4x1024xf32>
    %27 = arith.mulf %25, %26 : vector<2x4x1024xf32>
    %cst_12 = arith.constant dense<0.000000e+00> : vector<2x1024xf32>
    %28 = vector.multi_reduction <add>, %27, %cst_12 [1] : vector<2x4x1024xf32> to vector<2x1024xf32>
    %29 = vector.shape_cast %28 : vector<2x1024xf32> to vector<2x1x1024xf32>
    %c0_13 = arith.constant 0 : index
    %c0_14 = arith.constant 0 : index
    %c0_15 = arith.constant 0 : index
    %30 = vector.load %arg5[%c0_13, %c0_14, %c0_15] : memref<2x1x1024xf32, #tpu.memory_space<vmem>>, vector<2x1x1024xf32>
    tpu.vector_store %arg5[%c0_13, %c0_14, %c0_15], %29 {strides = array<i32>} : memref<2x1x1024xf32, #tpu.memory_space<vmem>>, vector<2x1x1024xf32>,
    return
  }
  func.func @transform_0(%arg0: i32) -> (i32, i32, i32) {
    %c0_i32 = arith.constant 0 : i32
    %c0_i32_0 = arith.constant 0 : i32
    %c0_i32_1 = arith.constant 0 : i32
    return %arg0, %c0_i32, %c0_i32_0 : i32, i32, i32
  }
  func.func @transform_1(%arg0: i32) -> (i32, i32, i32) {
    %c0_i32 = arith.constant 0 : i32
    %c0_i32_0 = arith.constant 0 : i32
    %c0_i32_1 = arith.constant 0 : i32
    return %arg0, %c0_i32, %c0_i32_0 : i32, i32, i32
  }
  func.func @transform_2(%arg0: i32) -> (i32, i32) {
    %c0_i32 = arith.constant 0 : i32
    %c0_i32_0 = arith.constant 0 : i32
    %c0_i32_1 = arith.constant 0 : i32
    return %c0_i32, %c0_i32_0 : i32, i32
  }
  func.func @transform_3(%arg0: i32) -> (i32, i32) {
    %c0_i32 = arith.constant 0 : i32
    %c0_i32_0 = arith.constant 0 : i32
    %c0_i32_1 = arith.constant 0 : i32
    return %c0_i32, %c0_i32_0 : i32, i32
  }
  func.func @transform_4(%arg0: i32) -> (i32, i32, i32) {
    %c0_i32 = arith.constant 0 : i32
    %c0_i32_0 = arith.constant 0 : i32
    %c0_i32_1 = arith.constant 0 : i32
    return %arg0, %c0_i32, %c0_i32_0 : i32, i32, i32
  }
}

</mosaic_0001>

<bundles_post_ra>
// kernel: stacked_attention_forward.3
= control target key start
LH: loop header
LB: loop body
LE: loop exit
PB: predicated region body
PF: predicated region fallthrough
CT: control target
= control target key end

     0   :  { %s1810_s15 = smov 0   ;;  %s2200_s0 = inlined_call_operand.vmem [shape: bf16[4,16,1024], index: 0, kind: input, shape index: {}]   ;;  %s2201_s1 = inlined_call_operand.vmem [shape: f32[4,1,128], index: 1, kind: input, shape index: {}]   ;;  %s2202_s2 = inlined_call_operand.vmem [shape: bf16[1024,128], index: 2, kind: input, shape index: {}]   ;;  %s2203_s3 = inlined_call_operand.vmem [shape: f32[1,128], index: 3, kind: input, shape index: {}]   ;;  %s2204_s4 = inlined_call_operand.vmem [shape: f32[4,1,1024], index: 4, kind: output, shape index: {}]  }
   0x1 LB: > { %s1474_s16 = sadd.s32 4294967295, %s1782_s15   ;;  %p1478_p0 = scmp.ge.s32.totalorder %s1782_s15, 1  ;;  %s1782_s15 = sphi %s1810_s15, %s14_s15  }
   0x2   : > { %p174_p1 = scmp.lt.s32.totalorder %s1782_s15, 3 }
   0x4   : > { %p175_p2 = pnand %p1478_p0, %p174_p1 }
   0x5   : > { %v1692_v0 = vld [vmem:[%s2202_s2 + $0x40] sm:$0xff] (!%p175_p2)   ;;  %v1696_v4 = vld [vmem:[%s2202_s2 + $0x48] sm:$0xff] (!%p175_p2)   ;;  %v1700_v8 = vld [vmem:[%s2202_s2 + $0x50] sm:$0xff] (!%p175_p2)   ;;  %s1479_s25 = sshll.u32 (!%p175_p2), %s1474_s16, 1 }
   0x6   : > { %178 = sbr.rel (%p175_p2) target bundleno = 562 (0x232), region = 36  ;;  %v1693_v1 = vld [vmem:[%s2202_s2 + $0xc0] sm:$0xff] (!%p175_p2)   ;;  %1571 = vmatprep.subr.bf16.mxu0 (!%p175_p2), %v1692_v0  ;;  %v1697_v5 = vld [vmem:[%s2202_s2 + $0xc8] sm:$0xff] (!%p175_p2)   ;;  %v1701_v9 = vld [vmem:[%s2202_s2 + $0xd0] sm:$0xff] (!%p175_p2)   ;;  %p206_p3 = scmp.lt.s32.totalorder (!%p175_p2), %s1479_s25, 3 }
   0x7   : > { %v1694_v2 = vld [vmem:[%s2202_s2] sm:$0xff] (!%p175_p2)   ;;  %1599 = vmatprep.subr.bf16.mxu1 (!%p175_p2), %v1693_v1  ;;  %v1698_v6 = vld [vmem:[%s2202_s2 + $0x8] sm:$0xff] (!%p175_p2)   ;;  %v1702_v10 = vld [vmem:[%s2202_s2 + $0x10] sm:$0xff] (!%p175_p2)  }
   0x8   : > { %v1695_v3 = vld [vmem:[%s2202_s2 + $0x80] sm:$0xff] (!%p175_p2)   ;;  %1572 = vmatpush3.bf16.msra.mxu0 (!%p175_p2), %v1694_v2  ;;  %v1699_v7 = vld [vmem:[%s2202_s2 + $0x88] sm:$0xff] (!%p175_p2)   ;;  %v1703_v11 = vld [vmem:[%s2202_s2 + $0x90] sm:$0xff] (!%p175_p2)  }
   0x9   : > { %1600 = vmatpush3.bf16.msra.mxu1 (!%p175_p2), %v1695_v3  ;;  %1573 = vmatprep.subr.bf16.mxu0 (!%p175_p2), %v1696_v4  ;;  %v1704_v12 = vld [vmem:[%s2202_s2 + $0x58] sm:$0xff] (!%p175_p2)   ;;  %v1708_v16 = vld [vmem:[%s2202_s2 + $0x60] sm:$0xff] (!%p175_p2)   ;;  %v1712_v20 = vld [vmem:[%s2202_s2 + $0x68] sm:$0xff] (!%p175_p2)  }
   0xa   : > { %1601 = vmatprep.subr.bf16.mxu1 (!%p175_p2), %v1697_v5  ;;  %v1705_v13 = vld [vmem:[%s2202_s2 + $0xd8] sm:$0xff] (!%p175_p2)   ;;  %v1709_v17 = vld [vmem:[%s2202_s2 + $0xe0] sm:$0xff] (!%p175_p2)   ;;  %v1713_v21 = vld [vmem:[%s2202_s2 + $0xe8] sm:$0xff] (!%p175_p2)  }
   0xb   : > { %v1706_v14 = vld [vmem:[%s2202_s2 + $0x18] sm:$0xff] (!%p175_p2)   ;;  %v1710_v18 = vld [vmem:[%s2202_s2 + $0x20] sm:$0xff] (!%p175_p2)   ;;  %v1714_v22 = vld [vmem:[%s2202_s2 + $0x28] sm:$0xff] (!%p175_p2)  }
   0xc   : > { %1574 = vmatpush3.bf16.msra.mxu0 (!%p175_p2), %v1698_v6  ;;  %v1707_v15 = vld [vmem:[%s2202_s2 + $0x98] sm:$0xff] (!%p175_p2)   ;;  %v1711_v19 = vld [vmem:[%s2202_s2 + $0xa0] sm:$0xff] (!%p175_p2)   ;;  %v1715_v23 = vld [vmem:[%s2202_s2 + $0xa8] sm:$0xff] (!%p175_p2)  }
   0xd   : > { %1602 = vmatpush3.bf16.msra.mxu1 %v1699_v7  ;;  %1575 = vmatprep.subr.bf16.mxu0 %v1700_v8  ;;  %s2206_s25 = smov (!%p206_p3, %s1479_s25), 3  ;;  %v1716_v24 = vld [vmem:[%s2202_s2 + $0x70] sm:$0xff]   ;;  %v1720_v28 = vld [vmem:[%s2202_s2 + $0x78] sm:$0xff]   ;;  %v1724_v38 = vld [vmem:[%s2202_s2 + $0x140] sm:$0xff]  }
   0xe   : > { %1603 = vmatprep.subr.bf16.mxu1 %v1701_v9  ;;  %v1717_v25 = vld [vmem:[%s2202_s2 + $0xf0] sm:$0xff]   ;;  %s1570_s23 = sshll.u32 %s2206_s25, 6  ;;  %v1721_v29 = vld [vmem:[%s2202_s2 + $0xf8] sm:$0xff]   ;;  %v1725_v41 = vld [vmem:[%s2202_s2 + $0x1c0] sm:$0xff]   ;;  %s215_s16 = scalar_lea.vmem %s2201_s1, %s2206_s25 }
   0xf   : > { %v1718_v26 = vld [vmem:[%s2202_s2 + $0x30] sm:$0xff]   ;;  %s1916_s7 = scalar_lea.vmem %s2200_s0, %s1570_s23  ;;  %v1722_v30 = vld [vmem:[%s2202_s2 + $0x38] sm:$0xff]   ;;  %v1726_v42 = vld [vmem:[%s2202_s2 + $0x100] sm:$0xff]   ;;  %s1484_s10 = sshll.u32 %s2206_s25, 3 }
  0x10   : > { %1576 = vmatpush3.bf16.msra.mxu0 %v1702_v10  ;;  %v1719_v27 = vld [vmem:[%s2202_s2 + $0xb0] sm:$0xff]   ;;  %v1723_v31 = vld [vmem:[%s2202_s2 + $0xb8] sm:$0xff]   ;;  %v1925_v32 = vld [vmem:[%s1916_s7] sm:$0xff]  ;;  %s2187_s12 = scalar_lea.vmem %s2204_s4, %s1484_s10 }
  0x11   : > { %1604 = vmatpush3.bf16.msra.mxu1 %v1703_v11  ;;  %1577 = vmatprep.subr.bf16.mxu0 %v1704_v12  ;;  %v1928_v33 = vld [vmem:[%s1916_s7 + $0x20] sm:$0xff]  ;;  %v1931_v34 = vld [vmem:[%s1916_s7 + $0x8] sm:$0xff]  ;;  %v1732_v48 = vld [vmem:[%s2202_s2 + $0x150] sm:$0xff]  }
  0x12   : > { %1605 = vmatprep.subr.bf16.mxu1 %v1705_v13  ;;  %v1486_v35 = vcombine.high %v1925_v32, %v1928_v33  ;;  %v1936_v36 = vld [vmem:[%s1916_s7 + $0x28] sm:$0xff]  ;;  %v1485_v39 = vcombine.low %v1925_v32, %v1928_v33  ;;  %v1727_v43 = vld [vmem:[%s2202_s2 + $0x180] sm:$0xff]   ;;  %v1733_v49 = vld [vmem:[%s2202_s2 + $0x1d0] sm:$0xff]  }
  0x13   : > { %v1488_v37 = vcombine.high %v1931_v34, %v1936_v36  ;;  %v1487_v40 = vcombine.low %v1931_v34, %v1936_v36  ;;  %v1728_v44 = vld [vmem:[%s2202_s2 + $0x148] sm:$0xff]   ;;  %v1734_v50 = vld [vmem:[%s2202_s2 + $0x110] sm:$0xff]   ;;  %v1736_v52 = vld [vmem:[%s2202_s2 + $0x158] sm:$0xff]  }
  0x14   : > { %1578 = vmatpush3.bf16.msra.mxu0 %v1706_v14  ;;  %864 = vmatprep.mubr.bf16.mxu0 %v1486_v35  ;;  %v1729_v45 = vld [vmem:[%s2202_s2 + $0x1c8] sm:$0xff]   ;;  %v1735_v51 = vld [vmem:[%s2202_s2 + $0x190] sm:$0xff]   ;;  %v1737_v53 = vld [vmem:[%s2202_s2 + $0x1d8] sm:$0xff]  }
  0x15   : > { %1606 = vmatpush3.bf16.msra.mxu1 %v1707_v15  ;;  %1579 = vmatprep.subr.bf16.mxu0 %v1708_v16  ;;  %v1730_v46 = vld [vmem:[%s2202_s2 + $0x108] sm:$0xff]   ;;  %v1738_v54 = vld [vmem:[%s2202_s2 + $0x118] sm:$0xff]   ;;  %v1740_v56 = vld [vmem:[%s2202_s2 + $0x160] sm:$0xff]  }
  0x16   : > { %1607 = vmatprep.subr.bf16.mxu1 %v1709_v17  ;;  %913 = vmatprep.mubr.bf16.mxu1 %v1488_v37  ;;  %v1731_v47 = vld [vmem:[%s2202_s2 + $0x188] sm:$0xff]   ;;  %v1739_v55 = vld [vmem:[%s2202_s2 + $0x198] sm:$0xff]   ;;  %v1741_v57 = vld [vmem:[%s2202_s2 + $0x1e0] sm:$0xff]  }
  0x17   : > { %v1742_v58 = vld [vmem:[%s2202_s2 + $0x120] sm:$0xff]   ;;  %v2013_v63 = vld [vmem:[%s1916_s7 + $0x48] sm:$0xff]  ;;  %v1748_v8 = vld [vmem:[%s2202_s2 + $0x170] sm:$0xff]  }
  0x18   : > { %1580 = vmatpush3.bf16.msra.mxu0 %v1710_v18  ;;  %v1743_v59 = vld [vmem:[%s2202_s2 + $0x1a0] sm:$0xff]   ;;  %v2016_v0 = vld [vmem:[%s1916_s7 + $0x68] sm:$0xff]  ;;  %v1749_v9 = vld [vmem:[%s2202_s2 + $0x1f0] sm:$0xff]  }
  0x19   : > { %1608 = vmatpush3.bf16.msra.mxu1 %v1711_v19  ;;  %1581 = vmatprep.subr.bf16.mxu0 %v1712_v20  ;;  %v2005_v60 = vld [vmem:[%s1916_s7 + $0x40] sm:$0xff]  ;;  %v1496_v1 = vcombine.high %v2013_v63, %v2016_v0  ;;  %v1744_v2 = vld [vmem:[%s2202_s2 + $0x168] sm:$0xff]   ;;  %v1495_v5 = vcombine.low %v2013_v63, %v2016_v0  ;;  %v1750_v10 = vld [vmem:[%s2202_s2 + $0x130] sm:$0xff]  }
  0x1a   : > { %1609 = vmatprep.subr.bf16.mxu1 %v1713_v21  ;;  %v2008_v61 = vld [vmem:[%s1916_s7 + $0x60] sm:$0xff]  ;;  %v1745_v3 = vld [vmem:[%s2202_s2 + $0x1e8] sm:$0xff]   ;;  %v1751_v11 = vld [vmem:[%s2202_s2 + $0x1b0] sm:$0xff]  }
  0x1b   : > { %v1494_v62 = vcombine.high %v2005_v60, %v2008_v61  ;;  %v1493_v4 = vcombine.low %v2005_v60, %v2008_v61  ;;  %v1746_v6 = vld [vmem:[%s2202_s2 + $0x128] sm:$0xff]   ;;  %v1752_v12 = vld [vmem:[%s2202_s2 + $0x178] sm:$0xff]   ;;  %v2061_v16 = vld [vmem:[%s1916_s7 + $0x10] sm:$0xff] }
  0x1c   : > { %1582 = vmatpush3.bf16.msra.mxu0 %v1714_v22  ;;  %v1747_v7 = vld [vmem:[%s2202_s2 + $0x1a8] sm:$0xff]   ;;  %v1753_v13 = vld [vmem:[%s2202_s2 + $0x1f8] sm:$0xff]   ;;  %v2064_v17 = vld [vmem:[%s1916_s7 + $0x30] sm:$0xff] }
  0x1d   : > { %1610 = vmatpush3.bf16.msra.mxu1 %v1715_v23  ;;  %1583 = vmatprep.subr.bf16.mxu0 %v1716_v24  ;;  %v1754_v14 = vld [vmem:[%s2202_s2 + $0x138] sm:$0xff]   ;;  %v1490_v20 = vcombine.high %v2061_v16, %v2064_v17  ;;  %v2077_v22 = vld [vmem:[%s1916_s7 + $0x50] sm:$0xff] }
  0x1e   : > { %1611 = vmatprep.subr.bf16.mxu1 %v1717_v25  ;;  %v1755_v15 = vld [vmem:[%s2202_s2 + $0x1b8] sm:$0xff]   ;;  %v2080_v23 = vld [vmem:[%s1916_s7 + $0x70] sm:$0xff] }
  0x1f   : > { %v2067_v18 = vld [vmem:[%s1916_s7 + $0x18] sm:$0xff] }
  0x20   : > { %1584 = vmatpush3.bf16.msra.mxu0 %v1718_v26  ;;  %v2070_v19 = vld [vmem:[%s1916_s7 + $0x38] sm:$0xff]  ;;  %v1489_v26 = vcombine.low %v2061_v16, %v2064_v17 }
  0x21   : > { %1612 = vmatpush3.bf16.msra.mxu1 %v1719_v27  ;;  %1585 = vmatprep.subr.bf16.mxu0 %v1720_v28  ;;  %v1492_v21 = vcombine.high %v2067_v18, %v2070_v19  ;;  %v2083_v24 = vld [vmem:[%s1916_s7 + $0x58] sm:$0xff]  ;;  %v1491_v27 = vcombine.low %v2067_v18, %v2070_v19  ;;  %v1498_v28 = vcombine.high %v2077_v22, %v2080_v23 }
  0x22   : > { %1613 = vmatprep.subr.bf16.mxu1 %v1721_v29  ;;  %v2086_v25 = vld [vmem:[%s1916_s7 + $0x78] sm:$0xff] }
  0x23   : > { %v1500_v29 = vcombine.high %v2083_v24, %v2086_v25 }
  0x24   : > { %1586 = vmatpush3.bf16.msra.mxu0 %v1722_v30  ;;  %v1497_v30 = vcombine.low %v2077_v22, %v2080_v23 }
  0x25   : > { %1614 = vmatpush3.bf16.msra.mxu1 %v1723_v31  ;;  %1627 = vmatprep.subr.bf16.mxu0 %v1724_v38  ;;  %v1499_v31 = vcombine.low %v2083_v24, %v2086_v25 }
  0x26   : > { %1655 = vmatprep.subr.bf16.mxu1 %v1725_v41 }
  0x27   : > { %865 = vmatmul.mubr.bf16.vlgmr.msra.gmra.mrb[0].mxu0 %v1485_v39 }
  0x28   : > { %914 = vmatmul.mubr.bf16.vlgmr.msra.gmra.mrb[0].mxu1 %v1487_v40  ;;  %1628 = vmatpush3.bf16.msra.mxu0 %v1726_v42 }
  0x29   : > { %1656 = vmatpush3.bf16.msra.mxu1 %v1727_v43  ;;  %1629 = vmatprep.subr.bf16.mxu0 %v1728_v44 }
  0x2a   : > { %1657 = vmatprep.subr.bf16.mxu1 %v1729_v45  ;;  %872 = vmatprep.mubr.bf16.mxu0 %v1494_v62 }
  0x2b   : > { %921 = vmatprep.mubr.bf16.mxu1 %v1496_v1 }
  0x2c   : > { %1630 = vmatpush3.bf16.msra.mxu0 %v1730_v46 }
  0x2d   : > { %1658 = vmatpush3.bf16.msra.mxu1 %v1731_v47  ;;  %1631 = vmatprep.subr.bf16.mxu0 %v1732_v48 }
  0x2e   : > { %1659 = vmatprep.subr.bf16.mxu1 %v1733_v49 }
  0x2f   : > { %873 = vmatmul.mubr.bf16.gmra.mrb[4].mxu0 %v1493_v4 }
  0x30   : > { %1632 = vmatpush3.bf16.msra.mxu0 %v1734_v50  ;;  %922 = vmatmul.mubr.bf16.gmra.mrb[4].mxu1 %v1495_v5 }
  0x31   : > { %1660 = vmatpush3.bf16.msra.mxu1 %v1735_v51  ;;  %1633 = vmatprep.subr.bf16.mxu0 %v1736_v52 }
  0x32   : > { %1661 = vmatprep.subr.bf16.mxu1 %v1737_v53  ;;  %962 = vmatprep.mubr.bf16.mxu0 %v1490_v20 }
  0x33   : > { %1011 = vmatprep.mubr.bf16.mxu1 %v1492_v21  ;;  %v1565_v21 = vld [vmem:[%s215_s16] ss:$0 sm:$0xff] }
  0x34   : > { %1634 = vmatpush3.bf16.msra.mxu0 %v1738_v54 }
  0x35   : > { %1662 = vmatpush3.bf16.msra.mxu1 %v1739_v55  ;;  %1635 = vmatprep.subr.bf16.mxu0 %v1740_v56 }
  0x36   : > { %1663 = vmatprep.subr.bf16.mxu1 %v1741_v57 }
  0x38   : > { %1636 = vmatpush3.bf16.msra.mxu0 %v1742_v58 }
  0x39   : > { %1664 = vmatpush3.bf16.msra.mxu1 %v1743_v59  ;;  %1637 = vmatprep.subr.bf16.mxu0 %v1744_v2 }
  0x3a   : > { %1665 = vmatprep.subr.bf16.mxu1 %v1745_v3 }
  0x3c   : > { %1638 = vmatpush3.bf16.msra.mxu0 %v1746_v6 }
  0x3d   : > { %1666 = vmatpush3.bf16.msra.mxu1 %v1747_v7  ;;  %1639 = vmatprep.subr.bf16.mxu0 %v1748_v8 }
  0x3e   : > { %1667 = vmatprep.subr.bf16.mxu1 %v1749_v9 }
  0x40   : > { %1640 = vmatpush3.bf16.msra.mxu0 %v1750_v10 }
  0x41   : > { %1668 = vmatpush3.bf16.msra.mxu1 %v1751_v11  ;;  %1641 = vmatprep.subr.bf16.mxu0 %v1752_v12 }
  0x42   : > { %1669 = vmatprep.subr.bf16.mxu1 %v1753_v13 }
  0x44   : > { %1642 = vmatpush3.bf16.msra.mxu0 %v1754_v14 }
  0x45   : > { %1670 = vmatpush3.bf16.msra.mxu1 %v1755_v15 }
  0x47   : > { %963 = vmatmul.mubr.bf16.vlgmr.msra.gmra.mrb[8].mxu0 %v1489_v26 }
  0x48   : > { %1012 = vmatmul.mubr.bf16.vlgmr.msra.gmra.mrb[8].mxu1 %v1491_v27  ;;  %970 = vmatprep.mubr.bf16.mxu0 %v1498_v28 }
  0x49   : > { %1019 = vmatprep.mubr.bf16.mxu1 %v1500_v29 }
  0x4f   : > { %971 = vmatmul.mubr.bf16.gmra.mrb[12].mxu0 %v1497_v30 }
  0x50   : > { %1020 = vmatmul.mubr.bf16.gmra.mrb[12].mxu1 %v1499_v31 }
  0xfa   : > { %v1587_v35 = vpop.f32.mrb[0].mxu0 }
  0xfb   : > { %v1615_v37 = vpop.f32.mrb[0].mxu1  ;;  %v1588_v38 = vpop.f32.mrb[1].mxu0 }
  0xfc   : > { %v1616_v39 = vpop.f32.mrb[1].mxu1  ;;  %v1589_v40 = vadd.f32 %v1588_v38, %v1587_v35  ;;  %v1590_v42 = vpop.f32.mrb[2].mxu0 }
  0xfd   : > { %v1617_v41 = vadd.f32 %v1616_v39, %v1615_v37  ;;  %v1618_v43 = vpop.f32.mrb[2].mxu1  ;;  %v1591_v44 = vpop.f32.mrb[3].mxu0 }
  0xfe   : > { %v1619_v45 = vpop.f32.mrb[3].mxu1  ;;  %v1592_v47 = vadd.f32 %v1591_v44, %v1590_v42 }
  0xff   : > { %v916_v46 = vadd.f32 %v1617_v41, %v1589_v40  ;;  %v1620_v48 = vadd.f32 %v1619_v45, %v1618_v43 }
 0x101   : > { %v919_v49 = vadd.f32 %v1620_v48, %v1592_v47  ;;  %v1566_v48 = vld [vmem:[%s215_s16 + $0x1] ss:$0 sm:$0xff] }
 0x102   : > { %v1593_v50 = vpop.f32.mrb[4].mxu0 }
 0x103   : > { %v1621_v51 = vpop.f32.mrb[4].mxu1  ;;  %v1594_v52 = vpop.f32.mrb[5].mxu0 }
 0x104   : > { %v1595_v53 = vadd.f32 %v1594_v52, %v1593_v50  ;;  %v1622_v54 = vpop.f32.mrb[5].mxu1  ;;  %v1596_v55 = vpop.f32.mrb[6].mxu0 }
 0x105   : > { %v1623_v56 = vadd.f32 %v1622_v54, %v1621_v51  ;;  %v1624_v57 = vpop.f32.mrb[6].mxu1  ;;  %v1597_v58 = vpop.f32.mrb[7].mxu0  ;;  %v1567_v54 = vld [vmem:[%s2203_s3] ss:$0 sm:$0xff] }
 0x106   : > { %v1598_v59 = vadd.f32 %v1597_v58, %v1596_v55  ;;  %v1625_v62 = vpop.f32.mrb[7].mxu1 }
 0x107   : > { %v924_v1 = vadd.f32 %v1623_v56, %v1595_v53  ;;  %v1626_v2 = vadd.f32 %v1625_v62, %v1624_v57 }
 0x109   : > { %v927_v3 = vadd.f32 %v1626_v2, %v1598_v59 }
 0x11a   : > { %v1643_v4 = vpop.f32.mrb[8].mxu0 }
 0x11b   : > { %v1671_v5 = vpop.f32.mrb[8].mxu1  ;;  %v1644_v6 = vpop.f32.mrb[9].mxu0 }
 0x11c   : > { %v1672_v7 = vpop.f32.mrb[9].mxu1  ;;  %v1645_v8 = vadd.f32 %v1644_v6, %v1643_v4  ;;  %v1646_v10 = vpop.f32.mrb[10].mxu0 }
 0x11d   : > { %v1673_v9 = vadd.f32 %v1672_v7, %v1671_v5  ;;  %v1674_v11 = vpop.f32.mrb[10].mxu1  ;;  %v1647_v12 = vpop.f32.mrb[11].mxu0 }
 0x11e   : > { %v1675_v13 = vpop.f32.mrb[11].mxu1  ;;  %v965_v14 = vadd.f32 %v1645_v8, %v916_v46  ;;  %v1648_v15 = vadd.f32 %v1647_v12, %v1646_v10 }
 0x11f   : > { %v1676_v20 = vadd.f32 %v1675_v13, %v1674_v11 }
 0x120   : > { %v1014_v26 = vadd.f32 %v1673_v9, %v965_v14  ;;  %v968_v27 = vadd.f32 %v1648_v15, %v919_v49 }
 0x122   : > { %v1042_v28 = vadd.f32 %v1565_v21, %v1014_v26  ;;  %v1017_v29 = vadd.f32 %v1676_v20, %v968_v27  ;;  %v1649_v30 = vpop.f32.mrb[12].mxu0 }
 0x123   : > { %v1677_v31 = vpop.f32.mrb[12].mxu1  ;;  %v1650_v35 = vpop.f32.mrb[13].mxu0 }
 0x124   : > { %v1678_v37 = vpop.f32.mrb[13].mxu1  ;;  %1756 = vtanh.f32 %v1042_v28  ;;  %v1043_v38 = vadd.f32 %v1565_v21, %v1017_v29  ;;  %v1651_v39 = vadd.f32 %v1650_v35, %v1649_v30  ;;  %v1652_v41 = vpop.f32.mrb[14].mxu0 }
 0x125   : > { %v1679_v40 = vadd.f32 %v1678_v37, %v1677_v31  ;;  %v1680_v42 = vpop.f32.mrb[14].mxu1  ;;  %v1653_v43 = vpop.f32.mrb[15].mxu0 }
 0x126   : > { %v1681_v44 = vpop.f32.mrb[15].mxu1  ;;  %1758 = vtanh.f32 %v1043_v38  ;;  %v973_v45 = vadd.f32 %v1651_v39, %v924_v1  ;;  %v1654_v46 = vadd.f32 %v1653_v43, %v1652_v41 }
 0x127   : > { %v1682_v47 = vadd.f32 %v1681_v44, %v1680_v42 }
 0x128   : > { %v1022_v49 = vadd.f32 %v1679_v40, %v973_v45  ;;  %v976_v50 = vadd.f32 %v1654_v46, %v927_v3 }
 0x12a   : > { %v1044_v51 = vadd.f32 %v1566_v48, %v1022_v49  ;;  %v1025_v52 = vadd.f32 %v1682_v47, %v976_v50 }
 0x12c   : > { %1760 = vtanh.f32 %v1044_v51  ;;  %v1045_v53 = vadd.f32 %v1566_v48, %v1025_v52 }
 0x12e   : > { %v1757_v55 = vpop.eup %1756  ;;  %1762 = vtanh.f32 %v1045_v53 }
 0x12f   : > { %v1057_v56 = vmul.f32 %v1757_v55, %v1567_v54 }
 0x130   : > { %v1759_v57 = vpop.eup %1758 }
 0x131   : > { %1061 = vadd.xlane.f32.xlu0 %v1057_v56  ;;  %v1058_v58 = vmul.f32 %v1759_v57, %v1567_v54  ;;  %v1115_v57 = vunpack.c.l.bf16 %v1925_v32 }
 0x135   : > { %1063 = vadd.xlane.f32.xlu0 %v1058_v58  ;;  %v1116_v58 = vunpack.c.h.bf16 %v1925_v32  ;;  %v1132_v32 = vunpack.c.h.bf16 %v2005_v60 }
 0x136   : > { %v1761_v59 = vpop.eup %1760 }
 0x137   : > { %v1059_v62 = vmul.f32 %v1761_v59, %v1567_v54  ;;  %v1123_v59 = vunpack.c.l.bf16 %v1928_v33 }
 0x138   : > { %v1763_v1 = vpop.eup %1762 }
 0x139   : > { %1065 = vadd.xlane.f32.xlu1 %v1059_v62  ;;  %v1060_v2 = vmul.f32 %v1763_v1, %v1567_v54  ;;  %v1124_v62 = vunpack.c.h.bf16 %v1928_v33  ;;  %v1117_v1 = vunpack.c.l.bf16 %v1931_v34  ;;  %v1140_v33 = vunpack.c.h.bf16 %v2008_v61 }
 0x13d   : > { %1067 = vadd.xlane.f32.xlu1 %v1060_v2  ;;  %v1784_v2 = vmov 1966171168  }
 0x1be   : > { %v1062_v3 = vpop.xlane.xlu0 %1061 }
 0x1c2   : > { %v1064_v4 = vpop.xlane.xlu0 %1063 }
 0x1c3   : > { %v1069_v5 = vmax.f32 %v1062_v3, %v1064_v4 }
 0x1c5   : > { %v1070_v6 = vrot.slane %v1069_v5, 4 }
 0x1c6   : > { %v1066_v7 = vpop.xlane.xlu1 %1065 }
 0x1c7   : > { %v1071_v8 = vmax.f32 %v1069_v5, %v1070_v6  ;;  %v1118_v6 = vunpack.c.h.bf16 %v1931_v34  ;;  %v1142_v34 = vunpack.c.h.bf16 %v2016_v0 }
 0x1c9   : > { %v1072_v9 = vrot.slane %v1071_v8, 2 }
 0x1ca   : > { %v1068_v10 = vpop.xlane.xlu1 %1067 }
 0x1cb   : > { %v1073_v11 = vmax.f32 %v1071_v8, %v1072_v9  ;;  %v1076_v12 = vmax.f32 %v1066_v7, %v1068_v10  ;;  %v1126_v8 = vunpack.c.h.bf16 %v1936_v36  ;;  %v1131_v9 = vunpack.c.l.bf16 %v2005_v60 }
 0x1cd   : > { %v1074_v13 = vrot.slane %v1073_v11, 1  ;;  %v1077_v14 = vrot.slane %v1076_v12, 4 }
 0x1cf   : > { %v1075_v15 = vmax.f32 %v1073_v11, %v1074_v13  ;;  %v1078_v20 = vmax.f32 %v1076_v12, %v1077_v14  ;;  %v1133_v11 = vunpack.c.l.bf16 %v2013_v63  ;;  %v1134_v12 = vunpack.c.h.bf16 %v2013_v63 }
 0x1d0   : > { %v1141_v13 = vunpack.c.l.bf16 %v2016_v0  ;;  %v1119_v14 = vunpack.c.l.bf16 %v2061_v16 }
 0x1d1   : > { %v1083_v21 = vsub.f32 %v1062_v3, %v1075_v15  ;;  %v1084_v26 = vsub.f32 %v1064_v4, %v1075_v15  ;;  %v1079_v27 = vrot.slane %v1078_v20, 2  ;;  %v1312_v3 = vunpack.c.l.s4 %v1784_v2 }
 0x1d2   : > { %v1314_v4 = vlaneseq }
 0x1d3   : > { %v1087_v28 = vmul.f32 1.442695, %v1083_v21  ;;  %v1089_v29 = vmul.f32 1.442695, %v1084_v26  ;;  %v1080_v30 = vmax.f32 %v1078_v20, %v1079_v27  ;;  %v1313_v15 = vunpack.c.0.s8 %v1312_v3 }
 0x1d4   : > { %v1315_v20 = vshrl.u32 %v1314_v4, 7  ;;  %v1127_v26 = vunpack.c.l.bf16 %v2064_v17  ;;  %v1128_v27 = vunpack.c.h.bf16 %v2064_v17  ;;  %v1137_v17 = vunpack.c.l.bf16 %v2083_v24 }
 0x1d5   : > { %1764 = vpow2.f32 %v1087_v28  ;;  %v1081_v31 = vrot.slane %v1080_v30, 1  ;;  %v1121_v28 = vunpack.c.l.bf16 %v2067_v18 }
 0x1d6   : > { %1766 = vpow2.f32 %v1089_v29  ;;  %v1122_v29 = vunpack.c.h.bf16 %v2067_v18  ;;  %v2143_v18 = vsub.s32 %v1313_v15, %v1315_v20 }
 0x1d7   : > { %v1082_v35 = vmax.f32 %v1080_v30, %v1081_v31  ;;  %v1129_v31 = vunpack.c.l.bf16 %v2070_v19 }
 0x1d9   : > { %v1085_v37 = vsub.f32 %v1066_v7, %v1082_v35  ;;  %v1086_v38 = vsub.f32 %v1068_v10, %v1082_v35  ;;  %v1125_v7 = vunpack.c.l.bf16 %v1936_v36  ;;  %v1139_v10 = vunpack.c.l.bf16 %v2008_v61 }
 0x1da   : > { %v1120_v36 = vunpack.c.h.bf16 %v2061_v16  ;;  %v1130_v35 = vunpack.c.h.bf16 %v2070_v19  ;;  %v1136_v16 = vunpack.c.h.bf16 %v2077_v22 }
 0x1db   : > { %v1091_v39 = vmul.f32 1.442695, %v1085_v37  ;;  %v1093_v40 = vmul.f32 1.442695, %v1086_v38  ;;  %v1135_v37 = vunpack.c.l.bf16 %v2077_v22  ;;  %v1143_v38 = vunpack.c.l.bf16 %v2080_v23 }
 0x1dd   : > { %1768 = vpow2.f32 %v1091_v39  ;;  %v1144_v39 = vunpack.c.h.bf16 %v2080_v23 }
 0x1de   : > { %1770 = vpow2.f32 %v1093_v40 }
 0x1df   : > { %v1765_v41 = vpop.eup %1764 }
 0x1e0   : > { %v1767_v42 = vpop.eup %1766 }
 0x1e1   : > { %v1095_v43 = vadd.f32 %v1767_v42, %v1765_v41 }
 0x1e3   : > { %v1096_v44 = vrot.slane %v1095_v43, 4 }
 0x1e5   : > { %v1097_v45 = vadd.f32 %v1096_v44, %v1095_v43  ;;  %v1138_v44 = vunpack.c.h.bf16 %v2083_v24 }
 0x1e7   : > { %v2107_v46 = vpop.eup %1768  ;;  %v1098_v47 = vrot.slane %v1097_v45, 2 }
 0x1e8   : > { %v2109_v48 = vpop.eup %1770 }
 0x1e9   : > { %v1099_v49 = vadd.f32 %v1098_v47, %v1097_v45  ;;  %v1102_v50 = vadd.f32 %v2109_v48, %v2107_v46 }
 0x1eb   : > { %v1100_v51 = vrot.slane %v1099_v49, 1  ;;  %v1103_v52 = vrot.slane %v1102_v50, 4 }
 0x1ed   : > { %v1101_v53 = vadd.f32 %v1100_v51, %v1099_v49  ;;  %v1104_v54 = vadd.f32 %v1103_v52, %v1102_v50 }
 0x1ef   : > { %1772 = vrcp.f32 %v1101_v53  ;;  %v1105_v55 = vrot.slane %v1104_v54, 2 }
 0x1f1   : > { %v1106_v56 = vadd.f32 %v1105_v55, %v1104_v54 }
 0x1f3   : > { %v1107_v5 = vrot.slane %v1106_v56, 1 }
 0x1f5   : > { %v1108_v21 = vadd.f32 %v1107_v5, %v1106_v56 }
 0x1f7   : > { %1774 = vrcp.f32 %v1108_v21 }
 0x1f9   : > { %v1773_v30 = vpop.eup %1772 }
 0x1fa   : > { %v1111_v40 = vmul.f32 %v1773_v30, %v1765_v41  ;;  %v1112_v43 = vmul.f32 %v1773_v30, %v1767_v42 }
 0x1fc   : > { %v1147_v45 = vmul.f32 %v1115_v57, %v1111_v40  ;;  %v1148_v47 = vmul.f32 %v1116_v58, %v1111_v40  ;;  %v1149_v19 = vmul.f32 %v1117_v1, %v1111_v40  ;;  %v1150_v49 = vmul.f32 %v1118_v6, %v1111_v40 }
 0x1fd   : > { %v1151_v50 = vmul.f32 %v1119_v14, %v1111_v40  ;;  %v1152_v51 = vmul.f32 %v1120_v36, %v1111_v40  ;;  %v1153_v52 = vmul.f32 %v1121_v28, %v1111_v40  ;;  %v1154_v53 = vmul.f32 %v1122_v29, %v1111_v40 }
 0x1fe   : > { %v1155_v54 = vmul.f32 %v1123_v59, %v1112_v43  ;;  %v1156_v55 = vmul.f32 %v1124_v62, %v1112_v43  ;;  %v1157_v56 = vmul.f32 %v1125_v7, %v1112_v43  ;;  %v1158_v41 = vmul.f32 %v1126_v8, %v1112_v43 }
 0x1ff   : > { %v1159_v42 = vmul.f32 %v1127_v26, %v1112_v43  ;;  %v1160_v2 = vmul.f32 %v1128_v27, %v1112_v43  ;;  %v1161_v3 = vmul.f32 %v1129_v31, %v1112_v43  ;;  %v1162_v4 = vmul.f32 %v1130_v35, %v1112_v43 }
 0x200   : > { %v1179_v5 = vadd.f32 %v1155_v54, %v1147_v45  ;;  %v1186_v15 = vadd.f32 %v1156_v55, %v1148_v47  ;;  %v1193_v20 = vadd.f32 %v1157_v56, %v1149_v19  ;;  %v1200_v21 = vadd.f32 %v1158_v41, %v1150_v49 }
 0x201   : > { %v1207_v57 = vadd.f32 %v1159_v42, %v1151_v50  ;;  %v1214_v58 = vadd.f32 %v1160_v2, %v1152_v51  ;;  %v1221_v1 = vadd.f32 %v1161_v3, %v1153_v52  ;;  %v1228_v6 = vadd.f32 %v1162_v4, %v1154_v53  ;;  %v1775_v35 = vpop.eup %1774 }
 0x202   : > { %v1180_v14 = vrot.slane %v1179_v5, 4  ;;  %v1187_v36 = vrot.slane %v1186_v15, 4  ;;  %v1194_v28 = vrot.slane %v1193_v20, 4  ;;  %v1201_v29 = vrot.slane %v1200_v21, 4 }
 0x203   : > { %v1208_v59 = vrot.slane %v1207_v57, 4  ;;  %v1215_v62 = vrot.slane %v1214_v58, 4  ;;  %v1222_v7 = vrot.slane %v1221_v1, 4  ;;  %v1229_v8 = vrot.slane %v1228_v6, 4 }
 0x204   : > { %v1181_v26 = vadd.f32 %v1180_v14, %v1179_v5  ;;  %v1188_v27 = vadd.f32 %v1187_v36, %v1186_v15  ;;  %v1195_v30 = vadd.f32 %v1194_v28, %v1193_v20  ;;  %v1202_v31 = vadd.f32 %v1201_v29, %v1200_v21 }
 0x205   : > { %v1209_v40 = vadd.f32 %v1208_v59, %v1207_v57  ;;  %v1216_v43 = vadd.f32 %v1215_v62, %v1214_v58  ;;  %v1223_v45 = vadd.f32 %v1222_v7, %v1221_v1  ;;  %v1230_v47 = vadd.f32 %v1229_v8, %v1228_v6 }
 0x206   : > { %v1182_v19 = vrot.slane %v1181_v26, 2  ;;  %v1189_v49 = vrot.slane %v1188_v27, 2  ;;  %v1196_v50 = vrot.slane %v1195_v30, 2  ;;  %v1203_v51 = vrot.slane %v1202_v31, 2 }
 0x207   : > { %v1210_v52 = vrot.slane %v1209_v40, 2  ;;  %v1217_v53 = vrot.slane %v1216_v43, 2  ;;  %v1224_v54 = vrot.slane %v1223_v45, 2  ;;  %v1231_v55 = vrot.slane %v1230_v47, 2 }
 0x208   : > { %v1183_v56 = vadd.f32 %v1182_v19, %v1181_v26  ;;  %v1190_v41 = vadd.f32 %v1189_v49, %v1188_v27  ;;  %v1197_v42 = vadd.f32 %v1196_v50, %v1195_v30  ;;  %v1204_v2 = vadd.f32 %v1203_v51, %v1202_v31 }
 0x209   : > { %v1211_v3 = vadd.f32 %v1210_v52, %v1209_v40  ;;  %v1218_v4 = vadd.f32 %v1217_v53, %v1216_v43  ;;  %v1225_v5 = vadd.f32 %v1224_v54, %v1223_v45  ;;  %v1232_v15 = vadd.f32 %v1231_v55, %v1230_v47 }
 0x20a   : > { %v1184_v20 = vrot.slane %v1183_v56, 1  ;;  %v1191_v21 = vrot.slane %v1190_v41, 1  ;;  %v1198_v57 = vrot.slane %v1197_v42, 1  ;;  %v1205_v58 = vrot.slane %v1204_v2, 1 }
 0x20b   : > { %v1212_v1 = vrot.slane %v1211_v3, 1  ;;  %v1219_v6 = vrot.slane %v1218_v4, 1  ;;  %v1226_v14 = vrot.slane %v1225_v5, 1  ;;  %v1233_v36 = vrot.slane %v1232_v15, 1 }
 0x20c   : > { %v1185_v28 = vadd.f32 %v1184_v20, %v1183_v56  ;;  %v1192_v29 = vadd.f32 %v1191_v21, %v1190_v41  ;;  %v1199_v59 = vadd.f32 %v1198_v57, %v1197_v42  ;;  %v1206_v62 = vadd.f32 %v1205_v58, %v1204_v2 }
 0x20d   : > { %v1213_v7 = vadd.f32 %v1212_v1, %v1211_v3  ;;  %v1220_v8 = vadd.f32 %v1219_v6, %v1218_v4  ;;  %v1227_v26 = vadd.f32 %v1226_v14, %v1225_v5  ;;  %v1234_v27 = vadd.f32 %v1233_v36, %v1232_v15 }
 0x20e   : > { %v1145_v30 = vunpack.c.l.bf16 %v2086_v25  ;;  %v1307_v31 = vcombine.low %v1185_v28, %v1192_v29  ;;  %v1308_v40 = vcombine.low %v1199_v59, %v1206_v62  ;;  %v1113_v43 = vmul.f32 %v1775_v35, %v2107_v46 }
 0x20f   : > { %v1146_v45 = vunpack.c.h.bf16 %v2086_v25  ;;  %v1309_v47 = vcombine.low %v1213_v7, %v1220_v8  ;;  %v1310_v19 = vcombine.low %v1227_v26, %v1234_v27  ;;  %v1114_v49 = vmul.f32 %v1775_v35, %v2109_v48 }
 0x210   : > { %v1317_v50 = vrot.slane %v1307_v31, %v2143_v18  ;;  %v1324_v51 = vrot.slane %v1308_v40, %v2143_v18  ;;  %v1163_v52 = vmul.f32 %v1131_v9, %v1113_v43  ;;  %v1164_v53 = vmul.f32 %v1132_v32, %v1113_v43 }
 0x211   : > { %v1331_v54 = vrot.slane %v1309_v47, %v2143_v18  ;;  %v1338_v46 = vrot.slane %v1310_v19, %v2143_v18  ;;  %v1165_v25 = vmul.f32 %v1133_v11, %v1113_v43  ;;  %v1166_v48 = vmul.f32 %v1134_v12, %v1113_v43 }
 0x212   : > { %v1339_v35 = vcombine.low %v1317_v50, %v1324_v51  ;;  %v1167_v55 = vmul.f32 %v1135_v37, %v1113_v43  ;;  %v1168_v9 = vmul.f32 %v1136_v16, %v1113_v43  ;;  %v1169_v60 = vmul.f32 %v1137_v17, %v1113_v43 }
 0x213   : > { %v1340_v32 = vcombine.low %v1331_v54, %v1338_v46  ;;  %v1170_v56 = vmul.f32 %v1138_v44, %v1113_v43  ;;  %v1171_v11 = vmul.f32 %v1139_v10, %v1114_v49  ;;  %v1172_v63 = vmul.f32 %v1140_v33, %v1114_v49 }
 0x214   : > { %v1347_v12 = vrot.slane %v1339_v35, %v2143_v18  ;;  %v1173_v22 = vmul.f32 %v1141_v13, %v1114_v49  ;;  %v1174_v37 = vmul.f32 %v1142_v34, %v1114_v49  ;;  %v1175_v16 = vmul.f32 %v1143_v38, %v1114_v49 }
 0x215   : > { %v1354_v24 = vrot.slane %v1340_v32, %v2143_v18  ;;  %v1176_v17 = vmul.f32 %v1144_v39, %v1114_v49  ;;  %v1177_v10 = vmul.f32 %v1145_v30, %v1114_v49  ;;  %v1178_v44 = vmul.f32 %v1146_v45, %v1114_v49 }
 0x216   : > { %v1235_v61 = vadd.f32 %v1171_v11, %v1163_v52  ;;  %v1242_v33 = vadd.f32 %v1172_v63, %v1164_v53  ;;  %v1249_v0 = vadd.f32 %v1173_v22, %v1165_v25  ;;  %v1256_v13 = vadd.f32 %v1174_v37, %v1166_v48 }
 0x217   : > { %v1355_v34 = vcombine.low %v1347_v12, %v1354_v24  ;;  %v1263_v41 = vadd.f32 %v1175_v16, %v1167_v55  ;;  %v1270_v38 = vadd.f32 %v1176_v17, %v1168_v9  ;;  %v1277_v42 = vadd.f32 %v1177_v10, %v1169_v60 }
 0x218   : > { %v1236_v2 = vrot.slane %v1235_v61, 4  ;;  %v1243_v3 = vrot.slane %v1242_v33, 4  ;;  %v1250_v23 = vrot.slane %v1249_v0, 4  ;;  %v1257_v39 = vrot.slane %v1256_v13, 4 }
 0x219   : > { %1407 = vst [vmem:[%s2187_s12] sm:$0xff] %v1355_v34  ;;  %v1264_v4 = vrot.slane %v1263_v41, 4  ;;  %v1271_v5 = vrot.slane %v1270_v38, 4  ;;  %v1278_v15 = vrot.slane %v1277_v42, 4  ;;  %v1284_v20 = vadd.f32 %v1178_v44, %v1170_v56 }
 0x21a   : > { %v1237_v21 = vadd.f32 %v1236_v2, %v1235_v61  ;;  %v1244_v57 = vadd.f32 %v1243_v3, %v1242_v33  ;;  %v1251_v58 = vadd.f32 %v1250_v23, %v1249_v0  ;;  %v1258_v1 = vadd.f32 %v1257_v39, %v1256_v13 }
 0x21b   : > { %v1265_v6 = vadd.f32 %v1264_v4, %v1263_v41  ;;  %v1272_v14 = vadd.f32 %v1271_v5, %v1270_v38  ;;  %v1279_v36 = vadd.f32 %v1278_v15, %v1277_v42  ;;  %v1285_v28 = vrot.slane %v1284_v20, 4 }
 0x21c   : > { %v1238_v29 = vrot.slane %v1237_v21, 2  ;;  %v1245_v59 = vrot.slane %v1244_v57, 2  ;;  %v1252_v62 = vrot.slane %v1251_v58, 2  ;;  %v1259_v7 = vrot.slane %v1258_v1, 2 }
 0x21d   : > { %v1266_v8 = vrot.slane %v1265_v6, 2  ;;  %v1273_v26 = vrot.slane %v1272_v14, 2  ;;  %v1280_v27 = vrot.slane %v1279_v36, 2  ;;  %v1286_v30 = vadd.f32 %v1285_v28, %v1284_v20 }
 0x21e   : > { %v1239_v31 = vadd.f32 %v1238_v29, %v1237_v21  ;;  %v1246_v40 = vadd.f32 %v1245_v59, %v1244_v57  ;;  %v1253_v43 = vadd.f32 %v1252_v62, %v1251_v58  ;;  %v1260_v45 = vadd.f32 %v1259_v7, %v1258_v1 }
 0x21f   : > { %v1267_v47 = vadd.f32 %v1266_v8, %v1265_v6  ;;  %v1274_v19 = vadd.f32 %v1273_v26, %v1272_v14  ;;  %v1281_v49 = vadd.f32 %v1280_v27, %v1279_v36  ;;  %v1287_v50 = vrot.slane %v1286_v30, 2 }
 0x220   : > { %v1240_v51 = vrot.slane %v1239_v31, 1  ;;  %v1247_v52 = vrot.slane %v1246_v40, 1  ;;  %v1254_v53 = vrot.slane %v1253_v43, 1  ;;  %v1261_v54 = vrot.slane %v1260_v45, 1 }
 0x221   : > { %v1268_v46 = vrot.slane %v1267_v47, 1  ;;  %v1275_v25 = vrot.slane %v1274_v19, 1  ;;  %v1282_v48 = vrot.slane %v1281_v49, 1  ;;  %v1288_v35 = vadd.f32 %v1287_v50, %v1286_v30 }
 0x222   : > { %v1241_v55 = vadd.f32 %v1240_v51, %v1239_v31  ;;  %v1248_v9 = vadd.f32 %v1247_v52, %v1246_v40  ;;  %v1255_v60 = vadd.f32 %v1254_v53, %v1253_v43  ;;  %v1262_v32 = vadd.f32 %v1261_v54, %v1260_v45 }
 0x223   : > { %v1269_v56 = vadd.f32 %v1268_v46, %v1267_v47  ;;  %v1276_v11 = vadd.f32 %v1275_v25, %v1274_v19  ;;  %v1283_v63 = vadd.f32 %v1282_v48, %v1281_v49  ;;  %v1289_v12 = vrot.slane %v1288_v35, 1 }
 0x224   : > { %v1356_v22 = vcombine.low %v1241_v55, %v1248_v9  ;;  %v1357_v37 = vcombine.low %v1255_v60, %v1262_v32 }
 0x225   : > { %v1290_v16 = vadd.f32 %v1289_v12, %v1288_v35  ;;  %v1358_v24 = vcombine.low %v1269_v56, %v1276_v11 }
 0x226   : > { %v1366_v17 = vrot.slane %v1356_v22, %v2143_v18  ;;  %v1373_v10 = vrot.slane %v1357_v37, %v2143_v18 }
 0x227   : > { %v1359_v44 = vcombine.low %v1283_v63, %v1290_v16  ;;  %v1380_v61 = vrot.slane %v1358_v24, %v2143_v18 }
 0x228   : > { %v1388_v33 = vcombine.low %v1366_v17, %v1373_v10 }
 0x229   : > { %v1387_v0 = vrot.slane %v1359_v44, %v2143_v18 }
 0x22a   : > { %v1396_v34 = vrot.slane %v1388_v33, %v2143_v18 }
 0x22b   : > { %v1389_v13 = vcombine.low %v1380_v61, %v1387_v0 }
 0x22d   : > { %v1403_v41 = vrot.slane %v1389_v13, %v2143_v18 }
 0x22f   : > { %v1404_v38 = vcombine.low %v1396_v34, %v1403_v41 }
 0x231   : > { %1408 = vst [vmem:[%s2187_s12 + $0x8] sm:$0xff] %v1404_v38 }
 0x232 PF: > { %s14_s15 = sadd.s32 1, %s1782_s15  }
 0x233   : > { %p11_p4 = scmp.ge.s32.totalorder %s14_s15, 4  }
 0x235   :  { %13 = sbr.rel (!%p11_p4) target bundleno = 1 (0x1), region = 69 }

// kernel: stacked_attention_forward.5
= control target key start
LH: loop header
LB: loop body
LE: loop exit
PB: predicated region body
PF: predicated region fallthrough
CT: control target
= control target key end

     0   :  { %s1755_s0 = inlined_call_operand.vmem [shape: f32[4,1024], index: 0, kind: input, shape index: {}]   ;;  %s1756_s1 = inlined_call_operand.vmem [shape: f32[4,1024], index: 1, kind: input, shape index: {}]   ;;  %s1757_s2 = inlined_call_operand.vmem [shape: f32[1024,256], index: 2, kind: input, shape index: {}]   ;;  %s1758_s3 = inlined_call_operand.vmem [shape: f32[1,256], index: 3, kind: input, shape index: {}]   ;;  %s1759_s4 = inlined_call_operand.hbm [shape: f32[4,256], index: 4, kind: output, shape index: {}]  }
   0x1   :  { %v31_v0 = vld [vmem:[%s1757_s2 + $0x8] sm:$0xff]  ;;  %v33_v1 = vld [vmem:[%s1757_s2 + $0x18] sm:$0xff]  ;;  %v30_v5 = vld [vmem:[%s1757_s2] sm:$0xff] }
   0x2   :  { %v159_v2 = vld [vmem:[%s1757_s2 + $0x408] sm:$0xff]  ;;  %v613_v3 = vpack.c.bf16 %v33_v1, %v31_v0  ;;  %v161_v4 = vld [vmem:[%s1757_s2 + $0x418] sm:$0xff]  ;;  %v32_v6 = vld [vmem:[%s1757_s2 + $0x10] sm:$0xff] }
   0x3   :  { %v741_v7 = vpack.c.bf16 %v161_v4, %v159_v2  ;;  %v615_v8 = vpack.c.bf16 %v32_v6, %v30_v5  ;;  %v158_v9 = vld [vmem:[%s1757_s2 + $0x400] sm:$0xff]  ;;  %v160_v10 = vld [vmem:[%s1757_s2 + $0x410] sm:$0xff]  ;;  %v35_v11 = vld [vmem:[%s1757_s2 + $0x28] sm:$0xff] }
   0x4   :  { %614 = vmatprep.subr.bf16.mxu1 %v613_v3  ;;  %v743_v12 = vpack.c.bf16 %v160_v10, %v158_v9  ;;  %v37_v13 = vld [vmem:[%s1757_s2 + $0x38] sm:$0xff]  ;;  %v163_v14 = vld [vmem:[%s1757_s2 + $0x428] sm:$0xff]  ;;  %v34_v18 = vld [vmem:[%s1757_s2 + $0x20] sm:$0xff] }
   0x5   :  { %v165_v15 = vld [vmem:[%s1757_s2 + $0x438] sm:$0xff]  ;;  %742 = vmatprep.subr.bf16.mxu0 %v741_v7  ;;  %616 = vmatpush1.bf16.msra.mxu1 %v615_v8  ;;  %v617_v16 = vpack.c.bf16 %v37_v13, %v35_v11  ;;  %v36_v19 = vld [vmem:[%s1757_s2 + $0x30] sm:$0xff]  ;;  %v162_v20 = vld [vmem:[%s1757_s2 + $0x420] sm:$0xff] }
   0x6   :  { %v745_v17 = vpack.c.bf16 %v165_v15, %v163_v14  ;;  %744 = vmatpush1.bf16.msra.mxu0 %v743_v12  ;;  %v619_v21 = vpack.c.bf16 %v36_v19, %v34_v18  ;;  %v164_v22 = vld [vmem:[%s1757_s2 + $0x430] sm:$0xff]  ;;  %v39_v23 = vld [vmem:[%s1757_s2 + $0x48] sm:$0xff]  ;;  %v41_v24 = vld [vmem:[%s1757_s2 + $0x58] sm:$0xff] }
   0x7   :  { %618 = vmatprep.subr.bf16.mxu1 %v617_v16  ;;  %v747_v25 = vpack.c.bf16 %v164_v22, %v162_v20  ;;  %v621_v26 = vpack.c.bf16 %v41_v24, %v39_v23  ;;  %v167_v27 = vld [vmem:[%s1757_s2 + $0x448] sm:$0xff]  ;;  %v169_v28 = vld [vmem:[%s1757_s2 + $0x458] sm:$0xff]  ;;  %v38_v29 = vld [vmem:[%s1757_s2 + $0x40] sm:$0xff] }
   0x8   :  { %746 = vmatprep.subr.bf16.mxu0 %v745_v17  ;;  %v749_v30 = vpack.c.bf16 %v169_v28, %v167_v27  ;;  %v40_v31 = vld [vmem:[%s1757_s2 + $0x50] sm:$0xff]  ;;  %v166_v32 = vld [vmem:[%s1757_s2 + $0x440] sm:$0xff]  ;;  %v43_v35 = vld [vmem:[%s1757_s2 + $0x68] sm:$0xff] }
   0x9   :  { %v168_v33 = vld [vmem:[%s1757_s2 + $0x450] sm:$0xff]  ;;  %620 = vmatpush1.bf16.msra.mxu1 %v619_v21  ;;  %v623_v34 = vpack.c.bf16 %v40_v31, %v38_v29  ;;  %v45_v36 = vld [vmem:[%s1757_s2 + $0x78] sm:$0xff]  ;;  %v171_v37 = vld [vmem:[%s1757_s2 + $0x468] sm:$0xff] }
   0xa   :  { %748 = vmatpush1.bf16.msra.mxu0 %v747_v25  ;;  %622 = vmatprep.subr.bf16.mxu1 %v621_v26  ;;  %v751_v38 = vpack.c.bf16 %v168_v33, %v166_v32  ;;  %v625_v39 = vpack.c.bf16 %v45_v36, %v43_v35  ;;  %v173_v40 = vld [vmem:[%s1757_s2 + $0x478] sm:$0xff]  ;;  %v42_v41 = vld [vmem:[%s1757_s2 + $0x60] sm:$0xff]  ;;  %v44_v42 = vld [vmem:[%s1757_s2 + $0x70] sm:$0xff] }
   0xb   :  { %750 = vmatprep.subr.bf16.mxu0 %v749_v30  ;;  %v753_v43 = vpack.c.bf16 %v173_v40, %v171_v37  ;;  %v170_v44 = vld [vmem:[%s1757_s2 + $0x460] sm:$0xff]  ;;  %v172_v45 = vld [vmem:[%s1757_s2 + $0x470] sm:$0xff]  ;;  %v47_v46 = vld [vmem:[%s1757_s2 + $0x88] sm:$0xff]  ;;  %v627_v50 = vpack.c.bf16 %v44_v42, %v42_v41 }
   0xc   :  { %v49_v47 = vld [vmem:[%s1757_s2 + $0x98] sm:$0xff]  ;;  %v175_v48 = vld [vmem:[%s1757_s2 + $0x488] sm:$0xff]  ;;  %v755_v51 = vpack.c.bf16 %v172_v45, %v170_v44  ;;  %v46_v53 = vld [vmem:[%s1757_s2 + $0x80] sm:$0xff] }
   0xd   :  { %v177_v49 = vld [vmem:[%s1757_s2 + $0x498] sm:$0xff]  ;;  %624 = vmatpush1.bf16.msra.mxu1 %v623_v34  ;;  %v629_v52 = vpack.c.bf16 %v49_v47, %v47_v46  ;;  %v48_v54 = vld [vmem:[%s1757_s2 + $0x90] sm:$0xff]  ;;  %v174_v55 = vld [vmem:[%s1757_s2 + $0x480] sm:$0xff] }
   0xe   :  { %752 = vmatpush1.bf16.msra.mxu0 %v751_v38  ;;  %626 = vmatprep.subr.bf16.mxu1 %v625_v39  ;;  %v757_v56 = vpack.c.bf16 %v177_v49, %v175_v48  ;;  %v176_v57 = vld [vmem:[%s1757_s2 + $0x490] sm:$0xff]  ;;  %v51_v58 = vld [vmem:[%s1757_s2 + $0xa8] sm:$0xff]  ;;  %v53_v59 = vld [vmem:[%s1757_s2 + $0xb8] sm:$0xff]  ;;  %v631_v62 = vpack.c.bf16 %v48_v54, %v46_v53 }
   0xf   :  { %754 = vmatprep.subr.bf16.mxu0 %v753_v43  ;;  %v179_v60 = vld [vmem:[%s1757_s2 + $0x4a8] sm:$0xff]  ;;  %v181_v61 = vld [vmem:[%s1757_s2 + $0x4b8] sm:$0xff]  ;;  %v759_v63 = vpack.c.bf16 %v176_v57, %v174_v55  ;;  %v633_v0 = vpack.c.bf16 %v53_v59, %v51_v58  ;;  %v50_v1 = vld [vmem:[%s1757_s2 + $0xa0] sm:$0xff] }
  0x10   :  { %v52_v2 = vld [vmem:[%s1757_s2 + $0xb0] sm:$0xff]  ;;  %v178_v3 = vld [vmem:[%s1757_s2 + $0x4a0] sm:$0xff]  ;;  %v761_v4 = vpack.c.bf16 %v181_v61, %v179_v60  ;;  %v55_v6 = vld [vmem:[%s1757_s2 + $0xc8] sm:$0xff] }
  0x11   :  { %628 = vmatpush1.bf16.msra.mxu1 %v627_v50  ;;  %v180_v5 = vld [vmem:[%s1757_s2 + $0x4b0] sm:$0xff]  ;;  %v57_v7 = vld [vmem:[%s1757_s2 + $0xd8] sm:$0xff]  ;;  %v183_v8 = vld [vmem:[%s1757_s2 + $0x4c8] sm:$0xff]  ;;  %v635_v10 = vpack.c.bf16 %v52_v2, %v50_v1 }
  0x12   :  { %756 = vmatpush1.bf16.msra.mxu0 %v755_v51  ;;  %630 = vmatprep.subr.bf16.mxu1 %v629_v52  ;;  %v185_v9 = vld [vmem:[%s1757_s2 + $0x4d8] sm:$0xff]  ;;  %v763_v11 = vpack.c.bf16 %v180_v5, %v178_v3  ;;  %v637_v12 = vpack.c.bf16 %v57_v7, %v55_v6  ;;  %v54_v13 = vld [vmem:[%s1757_s2 + $0xc0] sm:$0xff]  ;;  %v56_v14 = vld [vmem:[%s1757_s2 + $0xd0] sm:$0xff] }
  0x13   :  { %758 = vmatprep.subr.bf16.mxu0 %v757_v56  ;;  %v182_v15 = vld [vmem:[%s1757_s2 + $0x4c0] sm:$0xff]  ;;  %v765_v16 = vpack.c.bf16 %v185_v9, %v183_v8  ;;  %v184_v17 = vld [vmem:[%s1757_s2 + $0x4d0] sm:$0xff]  ;;  %v59_v18 = vld [vmem:[%s1757_s2 + $0xe8] sm:$0xff]  ;;  %v639_v22 = vpack.c.bf16 %v56_v14, %v54_v13 }
  0x14   :  { %v61_v19 = vld [vmem:[%s1757_s2 + $0xf8] sm:$0xff]  ;;  %v187_v20 = vld [vmem:[%s1757_s2 + $0x4e8] sm:$0xff]  ;;  %v767_v23 = vpack.c.bf16 %v184_v17, %v182_v15  ;;  %v58_v25 = vld [vmem:[%s1757_s2 + $0xe0] sm:$0xff] }
  0x15   :  { %632 = vmatpush1.bf16.msra.mxu1 %v631_v62  ;;  %v189_v21 = vld [vmem:[%s1757_s2 + $0x4f8] sm:$0xff]  ;;  %v641_v24 = vpack.c.bf16 %v61_v19, %v59_v18  ;;  %v60_v26 = vld [vmem:[%s1757_s2 + $0xf0] sm:$0xff]  ;;  %v186_v27 = vld [vmem:[%s1757_s2 + $0x4e0] sm:$0xff] }
  0x16   :  { %760 = vmatpush1.bf16.msra.mxu0 %v759_v63  ;;  %634 = vmatprep.subr.bf16.mxu1 %v633_v0  ;;  %v769_v28 = vpack.c.bf16 %v189_v21, %v187_v20  ;;  %v188_v29 = vld [vmem:[%s1757_s2 + $0x4f0] sm:$0xff]  ;;  %v63_v30 = vld [vmem:[%s1757_s2 + $0x108] sm:$0xff]  ;;  %v65_v31 = vld [vmem:[%s1757_s2 + $0x118] sm:$0xff]  ;;  %v643_v34 = vpack.c.bf16 %v60_v26, %v58_v25 }
  0x17   :  { %762 = vmatprep.subr.bf16.mxu0 %v761_v4  ;;  %v191_v32 = vld [vmem:[%s1757_s2 + $0x508] sm:$0xff]  ;;  %v193_v33 = vld [vmem:[%s1757_s2 + $0x518] sm:$0xff]  ;;  %v771_v35 = vpack.c.bf16 %v188_v29, %v186_v27  ;;  %v645_v36 = vpack.c.bf16 %v65_v31, %v63_v30  ;;  %v62_v37 = vld [vmem:[%s1757_s2 + $0x100] sm:$0xff] }
  0x18   :  { %v64_v38 = vld [vmem:[%s1757_s2 + $0x110] sm:$0xff]  ;;  %v190_v39 = vld [vmem:[%s1757_s2 + $0x500] sm:$0xff]  ;;  %v773_v40 = vpack.c.bf16 %v193_v33, %v191_v32  ;;  %v67_v42 = vld [vmem:[%s1757_s2 + $0x128] sm:$0xff] }
  0x19   :  { %636 = vmatpush1.bf16.msra.mxu1 %v635_v10  ;;  %v192_v41 = vld [vmem:[%s1757_s2 + $0x510] sm:$0xff]  ;;  %v69_v43 = vld [vmem:[%s1757_s2 + $0x138] sm:$0xff]  ;;  %v195_v44 = vld [vmem:[%s1757_s2 + $0x528] sm:$0xff]  ;;  %v647_v46 = vpack.c.bf16 %v64_v38, %v62_v37 }
  0x1a   :  { %764 = vmatpush1.bf16.msra.mxu0 %v763_v11  ;;  %638 = vmatprep.subr.bf16.mxu1 %v637_v12  ;;  %v197_v45 = vld [vmem:[%s1757_s2 + $0x538] sm:$0xff]  ;;  %v775_v47 = vpack.c.bf16 %v192_v41, %v190_v39  ;;  %v649_v48 = vpack.c.bf16 %v69_v43, %v67_v42  ;;  %v66_v49 = vld [vmem:[%s1757_s2 + $0x120] sm:$0xff]  ;;  %v68_v50 = vld [vmem:[%s1757_s2 + $0x130] sm:$0xff] }
  0x1b   :  { %766 = vmatprep.subr.bf16.mxu0 %v765_v16  ;;  %v194_v51 = vld [vmem:[%s1757_s2 + $0x520] sm:$0xff]  ;;  %v777_v52 = vpack.c.bf16 %v197_v45, %v195_v44  ;;  %v196_v53 = vld [vmem:[%s1757_s2 + $0x530] sm:$0xff]  ;;  %v71_v54 = vld [vmem:[%s1757_s2 + $0x148] sm:$0xff]  ;;  %v651_v58 = vpack.c.bf16 %v68_v50, %v66_v49 }
  0x1c   :  { %v73_v55 = vld [vmem:[%s1757_s2 + $0x158] sm:$0xff]  ;;  %v199_v56 = vld [vmem:[%s1757_s2 + $0x548] sm:$0xff]  ;;  %v779_v59 = vpack.c.bf16 %v196_v53, %v194_v51  ;;  %v70_v61 = vld [vmem:[%s1757_s2 + $0x140] sm:$0xff] }
  0x1d   :  { %640 = vmatpush1.bf16.msra.mxu1 %v639_v22  ;;  %v201_v57 = vld [vmem:[%s1757_s2 + $0x558] sm:$0xff]  ;;  %v653_v60 = vpack.c.bf16 %v73_v55, %v71_v54  ;;  %v72_v62 = vld [vmem:[%s1757_s2 + $0x150] sm:$0xff]  ;;  %v198_v63 = vld [vmem:[%s1757_s2 + $0x540] sm:$0xff] }
  0x1e   :  { %768 = vmatpush1.bf16.msra.mxu0 %v767_v23  ;;  %642 = vmatprep.subr.bf16.mxu1 %v641_v24  ;;  %v781_v0 = vpack.c.bf16 %v201_v57, %v199_v56  ;;  %v200_v1 = vld [vmem:[%s1757_s2 + $0x550] sm:$0xff]  ;;  %v75_v2 = vld [vmem:[%s1757_s2 + $0x168] sm:$0xff]  ;;  %v77_v3 = vld [vmem:[%s1757_s2 + $0x178] sm:$0xff]  ;;  %v655_v6 = vpack.c.bf16 %v72_v62, %v70_v61 }
  0x1f   :  { %770 = vmatprep.subr.bf16.mxu0 %v769_v28  ;;  %v203_v4 = vld [vmem:[%s1757_s2 + $0x568] sm:$0xff]  ;;  %v205_v5 = vld [vmem:[%s1757_s2 + $0x578] sm:$0xff]  ;;  %v74_v7 = vld [vmem:[%s1757_s2 + $0x160] sm:$0xff]  ;;  %v783_v8 = vpack.c.bf16 %v200_v1, %v198_v63  ;;  %v657_v9 = vpack.c.bf16 %v77_v3, %v75_v2 }
  0x20   :  { %v76_v10 = vld [vmem:[%s1757_s2 + $0x170] sm:$0xff]  ;;  %v202_v11 = vld [vmem:[%s1757_s2 + $0x560] sm:$0xff]  ;;  %v785_v13 = vpack.c.bf16 %v205_v5, %v203_v4  ;;  %v79_v14 = vld [vmem:[%s1757_s2 + $0x188] sm:$0xff] }
  0x21   :  { %644 = vmatpush1.bf16.msra.mxu1 %v643_v34  ;;  %v204_v12 = vld [vmem:[%s1757_s2 + $0x570] sm:$0xff]  ;;  %v81_v15 = vld [vmem:[%s1757_s2 + $0x198] sm:$0xff]  ;;  %v18_v16 = vld [vmem:[%s1755_s0] sm:$0xff]  ;;  %v659_v20 = vpack.c.bf16 %v76_v10, %v74_v7 }
  0x22   :  { %772 = vmatpush1.bf16.msra.mxu0 %v771_v35  ;;  %646 = vmatprep.subr.bf16.mxu1 %v645_v36  ;;  %v207_v17 = vld [vmem:[%s1757_s2 + $0x588] sm:$0xff]  ;;  %v209_v18 = vld [vmem:[%s1757_s2 + $0x598] sm:$0xff]  ;;  %v22_v19 = vld [vmem:[%s1756_s1] sm:$0xff]  ;;  %v787_v24 = vpack.c.bf16 %v204_v12, %v202_v11  ;;  %v661_v25 = vpack.c.bf16 %v81_v15, %v79_v14 }
  0x23   :  { %774 = vmatprep.subr.bf16.mxu0 %v773_v40  ;;  %v1234_v21 = vadd.f32 %v22_v19, %v18_v16  ;;  %v20_v22 = vld [vmem:[%s1755_s0 + $0x10] sm:$0xff]  ;;  %v78_v26 = vld [vmem:[%s1757_s2 + $0x180] sm:$0xff]  ;;  %v789_v30 = vpack.c.bf16 %v209_v18, %v207_v17  ;;  %v83_v32 = vld [vmem:[%s1757_s2 + $0x1a8] sm:$0xff] }
  0x24   :  { %v24_v23 = vld [vmem:[%s1756_s1 + $0x10] sm:$0xff]  ;;  %v206_v28 = vld [vmem:[%s1757_s2 + $0x580] sm:$0xff]  ;;  %v85_v33 = vld [vmem:[%s1757_s2 + $0x1b8] sm:$0xff] }
  0x25   :  { %648 = vmatpush1.bf16.msra.mxu1 %v647_v46  ;;  %v80_v27 = vld [vmem:[%s1757_s2 + $0x190] sm:$0xff]  ;;  %v1251_v29 = vadd.f32 %v24_v23, %v20_v22  ;;  %v302_v34 = vcombine.high %v1234_v21, %v1234_v21  ;;  %v211_v35 = vld [vmem:[%s1757_s2 + $0x5a8] sm:$0xff]  ;;  %v213_v36 = vld [vmem:[%s1757_s2 + $0x5b8] sm:$0xff]  ;;  %v665_v40 = vpack.c.bf16 %v85_v33, %v83_v32 }
  0x26   :  { %776 = vmatpush1.bf16.msra.mxu0 %v775_v47  ;;  %650 = vmatprep.subr.bf16.mxu1 %v649_v48  ;;  %v208_v31 = vld [vmem:[%s1757_s2 + $0x590] sm:$0xff]  ;;  %v663_v38 = vpack.c.bf16 %v80_v27, %v78_v26  ;;  %v82_v41 = vld [vmem:[%s1757_s2 + $0x1a0] sm:$0xff]  ;;  %v793_v44 = vpack.c.bf16 %v213_v36, %v211_v35  ;;  %v87_v46 = vld [vmem:[%s1757_s2 + $0x1c8] sm:$0xff] }
  0x27   :  { %778 = vmatprep.subr.bf16.mxu0 %v777_v52  ;;  %v304_v37 = vcombine.high %v1251_v29, %v1251_v29  ;;  %374 = vmatprep.mubr.f32.mxu1 %v302_v34  ;;  %v791_v39 = vpack.c.bf16 %v208_v31, %v206_v28  ;;  %v84_v42 = vld [vmem:[%s1757_s2 + $0x1b0] sm:$0xff]  ;;  %v210_v43 = vld [vmem:[%s1757_s2 + $0x5a0] sm:$0xff]  ;;  %v89_v47 = vld [vmem:[%s1757_s2 + $0x1d8] sm:$0xff] }
  0x28   :  { %v212_v45 = vld [vmem:[%s1757_s2 + $0x5b0] sm:$0xff]  ;;  %v215_v48 = vld [vmem:[%s1757_s2 + $0x5c8] sm:$0xff]  ;;  %v217_v49 = vld [vmem:[%s1757_s2 + $0x5d8] sm:$0xff]  ;;  %v667_v50 = vpack.c.bf16 %v84_v42, %v82_v41  ;;  %v669_v52 = vpack.c.bf16 %v89_v47, %v87_v46 }
  0x29   :  { %652 = vmatpush1.bf16.msra.mxu1 %v651_v58  ;;  %516 = vmatprep.mubr.f32.mxu0 %v304_v37  ;;  %v795_v51 = vpack.c.bf16 %v212_v45, %v210_v43  ;;  %v86_v53 = vld [vmem:[%s1757_s2 + $0x1c0] sm:$0xff]  ;;  %v88_v54 = vld [vmem:[%s1757_s2 + $0x1d0] sm:$0xff]  ;;  %v797_v56 = vpack.c.bf16 %v217_v49, %v215_v48  ;;  %v91_v58 = vld [vmem:[%s1757_s2 + $0x1e8] sm:$0xff] }
  0x2a   :  { %780 = vmatpush1.bf16.msra.mxu0 %v779_v59  ;;  %654 = vmatprep.subr.bf16.mxu1 %v653_v60  ;;  %v214_v55 = vld [vmem:[%s1757_s2 + $0x5c0] sm:$0xff]  ;;  %v216_v57 = vld [vmem:[%s1757_s2 + $0x5d0] sm:$0xff]  ;;  %v93_v59 = vld [vmem:[%s1757_s2 + $0x1f8] sm:$0xff]  ;;  %v671_v62 = vpack.c.bf16 %v88_v54, %v86_v53 }
  0x2b   :  { %782 = vmatprep.subr.bf16.mxu0 %v781_v0  ;;  %v219_v60 = vld [vmem:[%s1757_s2 + $0x5e8] sm:$0xff]  ;;  %v221_v61 = vld [vmem:[%s1757_s2 + $0x5f8] sm:$0xff]  ;;  %v799_v63 = vpack.c.bf16 %v216_v57, %v214_v55  ;;  %v673_v0 = vpack.c.bf16 %v93_v59, %v91_v58  ;;  %v90_v1 = vld [vmem:[%s1757_s2 + $0x1e0] sm:$0xff] }
  0x2c   :  { %v92_v2 = vld [vmem:[%s1757_s2 + $0x1f0] sm:$0xff]  ;;  %v218_v3 = vld [vmem:[%s1757_s2 + $0x5e0] sm:$0xff]  ;;  %v801_v4 = vpack.c.bf16 %v221_v61, %v219_v60  ;;  %v97_v7 = vld [vmem:[%s1757_s2 + $0x218] sm:$0xff] }
  0x2d   :  { %656 = vmatpush1.bf16.msra.mxu1 %v655_v6  ;;  %v220_v5 = vld [vmem:[%s1757_s2 + $0x5f0] sm:$0xff]  ;;  %v95_v6 = vld [vmem:[%s1757_s2 + $0x208] sm:$0xff]  ;;  %v675_v10 = vpack.c.bf16 %v92_v2, %v90_v1  ;;  %v222_v15 = vld [vmem:[%s1757_s2 + $0x600] sm:$0xff] }
  0x2e   :  { %784 = vmatpush1.bf16.msra.mxu0 %v783_v8  ;;  %658 = vmatprep.subr.bf16.mxu1 %v657_v9  ;;  %v223_v8 = vld [vmem:[%s1757_s2 + $0x608] sm:$0xff]  ;;  %v225_v9 = vld [vmem:[%s1757_s2 + $0x618] sm:$0xff]  ;;  %v803_v11 = vpack.c.bf16 %v220_v5, %v218_v3  ;;  %v677_v12 = vpack.c.bf16 %v97_v7, %v95_v6  ;;  %v96_v14 = vld [vmem:[%s1757_s2 + $0x210] sm:$0xff] }
  0x2f   :  { %786 = vmatprep.subr.bf16.mxu0 %v785_v13  ;;  %v94_v13 = vld [vmem:[%s1757_s2 + $0x200] sm:$0xff]  ;;  %v805_v16 = vpack.c.bf16 %v225_v9, %v223_v8  ;;  %v224_v17 = vld [vmem:[%s1757_s2 + $0x610] sm:$0xff]  ;;  %v99_v18 = vld [vmem:[%s1757_s2 + $0x228] sm:$0xff] }
  0x30   :  { %v101_v19 = vld [vmem:[%s1757_s2 + $0x238] sm:$0xff]  ;;  %v679_v23 = vpack.c.bf16 %v96_v14, %v94_v13  ;;  %v98_v26 = vld [vmem:[%s1757_s2 + $0x220] sm:$0xff]  ;;  %v100_v27 = vld [vmem:[%s1757_s2 + $0x230] sm:$0xff] }
  0x31   :  { %660 = vmatpush1.bf16.msra.mxu1 %v659_v20  ;;  %v227_v20 = vld [vmem:[%s1757_s2 + $0x628] sm:$0xff]  ;;  %v229_v22 = vld [vmem:[%s1757_s2 + $0x638] sm:$0xff]  ;;  %v226_v28 = vld [vmem:[%s1757_s2 + $0x620] sm:$0xff]  ;;  %v683_v36 = vpack.c.bf16 %v100_v27, %v98_v26 }
  0x32   :  { %788 = vmatpush1.bf16.msra.mxu0 %v787_v24  ;;  %662 = vmatprep.subr.bf16.mxu1 %v661_v25  ;;  %v807_v24 = vpack.c.bf16 %v224_v17, %v222_v15  ;;  %v681_v25 = vpack.c.bf16 %v101_v19, %v99_v18  ;;  %v228_v31 = vld [vmem:[%s1757_s2 + $0x630] sm:$0xff]  ;;  %v103_v32 = vld [vmem:[%s1757_s2 + $0x248] sm:$0xff]  ;;  %v105_v33 = vld [vmem:[%s1757_s2 + $0x258] sm:$0xff] }
  0x33   :  { %790 = vmatprep.subr.bf16.mxu0 %v789_v30  ;;  %v809_v30 = vpack.c.bf16 %v229_v22, %v227_v20  ;;  %v231_v34 = vld [vmem:[%s1757_s2 + $0x648] sm:$0xff]  ;;  %v233_v35 = vld [vmem:[%s1757_s2 + $0x658] sm:$0xff]  ;;  %v811_v37 = vpack.c.bf16 %v228_v31, %v226_v28  ;;  %v106_v49 = vld [vmem:[%s1757_s2 + $0x260] sm:$0xff] }
  0x34   :  { %v813_v41 = vpack.c.bf16 %v233_v35, %v231_v34  ;;  %v107_v42 = vld [vmem:[%s1757_s2 + $0x268] sm:$0xff]  ;;  %v109_v43 = vld [vmem:[%s1757_s2 + $0x278] sm:$0xff]  ;;  %v236_v53 = vld [vmem:[%s1757_s2 + $0x670] sm:$0xff] }
  0x35   :  { %664 = vmatpush1.bf16.msra.mxu1 %v663_v38  ;;  %v685_v38 = vpack.c.bf16 %v105_v33, %v103_v32  ;;  %v237_v45 = vld [vmem:[%s1757_s2 + $0x678] sm:$0xff]  ;;  %v689_v48 = vpack.c.bf16 %v109_v43, %v107_v42  ;;  %v111_v54 = vld [vmem:[%s1757_s2 + $0x288] sm:$0xff]  ;;  %v110_v61 = vld [vmem:[%s1757_s2 + $0x280] sm:$0xff] }
  0x36   :  { %792 = vmatpush1.bf16.msra.mxu0 %v791_v39  ;;  %666 = vmatprep.subr.bf16.mxu1 %v665_v40  ;;  %v104_v39 = vld [vmem:[%s1757_s2 + $0x250] sm:$0xff]  ;;  %v230_v40 = vld [vmem:[%s1757_s2 + $0x640] sm:$0xff]  ;;  %v113_v55 = vld [vmem:[%s1757_s2 + $0x298] sm:$0xff] }
  0x37   :  { %794 = vmatprep.subr.bf16.mxu0 %v793_v44  ;;  %v235_v44 = vld [vmem:[%s1757_s2 + $0x668] sm:$0xff]  ;;  %v241_v57 = vld [vmem:[%s1757_s2 + $0x698] sm:$0xff]  ;;  %v693_v60 = vpack.c.bf16 %v113_v55, %v111_v54  ;;  %v240_v1 = vld [vmem:[%s1757_s2 + $0x690] sm:$0xff] }
  0x38   :  { %v115_v2 = vld [vmem:[%s1757_s2 + $0x2a8] sm:$0xff]  ;;  %v117_v3 = vld [vmem:[%s1757_s2 + $0x2b8] sm:$0xff]  ;;  %v114_v9 = vld [vmem:[%s1757_s2 + $0x2a0] sm:$0xff] }
  0x39   :  { %668 = vmatpush1.bf16.msra.mxu1 %v667_v50  ;;  %v108_v50 = vld [vmem:[%s1757_s2 + $0x270] sm:$0xff]  ;;  %v245_v5 = vld [vmem:[%s1757_s2 + $0x6b8] sm:$0xff]  ;;  %v697_v8 = vpack.c.bf16 %v117_v3, %v115_v2  ;;  %v119_v14 = vld [vmem:[%s1757_s2 + $0x2c8] sm:$0xff] }
  0x3a   :  { %796 = vmatpush1.bf16.msra.mxu0 %v795_v51  ;;  %670 = vmatprep.subr.bf16.mxu1 %v669_v52  ;;  %v234_v51 = vld [vmem:[%s1757_s2 + $0x660] sm:$0xff]  ;;  %v817_v52 = vpack.c.bf16 %v237_v45, %v235_v44  ;;  %v691_v58 = vpack.c.bf16 %v108_v50, %v106_v49  ;;  %v244_v13 = vld [vmem:[%s1757_s2 + $0x6b0] sm:$0xff]  ;;  %v121_v15 = vld [vmem:[%s1757_s2 + $0x2d8] sm:$0xff] }
  0x3b   :  { %798 = vmatprep.subr.bf16.mxu0 %v797_v56  ;;  %v239_v56 = vld [vmem:[%s1757_s2 + $0x688] sm:$0xff]  ;;  %v819_v59 = vpack.c.bf16 %v236_v53, %v234_v51  ;;  %v249_v17 = vld [vmem:[%s1757_s2 + $0x6d8] sm:$0xff]  ;;  %v118_v19 = vld [vmem:[%s1757_s2 + $0x2c0] sm:$0xff] }
  0x3c   :  { %v120_v20 = vld [vmem:[%s1757_s2 + $0x2d0] sm:$0xff]  ;;  %v246_v22 = vld [vmem:[%s1757_s2 + $0x6c0] sm:$0xff]  ;;  %v123_v26 = vld [vmem:[%s1757_s2 + $0x2e8] sm:$0xff] }
  0x3d   :  { %672 = vmatpush1.bf16.msra.mxu1 %v671_v62  ;;  %v112_v62 = vld [vmem:[%s1757_s2 + $0x290] sm:$0xff]  ;;  %v125_v27 = vld [vmem:[%s1757_s2 + $0x2f8] sm:$0xff]  ;;  %v19_v32 = vld [vmem:[%s1755_s0 + $0x8] sm:$0xff] }
  0x3e   :  { %800 = vmatpush1.bf16.msra.mxu0 %v799_v63  ;;  %674 = vmatprep.subr.bf16.mxu1 %v673_v0  ;;  %v238_v63 = vld [vmem:[%s1757_s2 + $0x680] sm:$0xff]  ;;  %v821_v0 = vpack.c.bf16 %v241_v57, %v239_v56  ;;  %v695_v6 = vpack.c.bf16 %v112_v62, %v110_v61  ;;  %v253_v31 = vld [vmem:[%s1757_s2 + $0x6f8] sm:$0xff]  ;;  %v23_v33 = vld [vmem:[%s1756_s1 + $0x8] sm:$0xff] }
  0x3f   :  { %802 = vmatprep.subr.bf16.mxu0 %v801_v4  ;;  %v243_v4 = vld [vmem:[%s1757_s2 + $0x6a8] sm:$0xff]  ;;  %v823_v7 = vpack.c.bf16 %v240_v1, %v238_v63  ;;  %v21_v34 = vld [vmem:[%s1755_s0 + $0x18] sm:$0xff] }
  0x40   :  { %v25_v35 = vld [vmem:[%s1756_s1 + $0x18] sm:$0xff] }
  0x41   :  { %676 = vmatpush1.bf16.msra.mxu1 %v675_v10  ;;  %v116_v10 = vld [vmem:[%s1757_s2 + $0x2b0] sm:$0xff] }
  0x42   :  { %804 = vmatpush1.bf16.msra.mxu0 %v803_v11  ;;  %678 = vmatprep.subr.bf16.mxu1 %v677_v12  ;;  %v242_v11 = vld [vmem:[%s1757_s2 + $0x6a0] sm:$0xff]  ;;  %v825_v12 = vpack.c.bf16 %v245_v5, %v243_v4  ;;  %v699_v18 = vpack.c.bf16 %v116_v10, %v114_v9 }
  0x43   :  { %806 = vmatprep.subr.bf16.mxu0 %v805_v16  ;;  %v247_v16 = vld [vmem:[%s1757_s2 + $0x6c8] sm:$0xff] }
  0x44   :  { %375 = vmatmul.mubr.f32.vlgmr.msra.gmra.mrb[0].mxu1 %v1234_v21  ;;  %v102_v21 = vld [vmem:[%s1757_s2 + $0x240] sm:$0xff]  ;;  %v829_v28 = vpack.c.bf16 %v249_v17, %v247_v16 }
  0x45   :  { %680 = vmatpush1.bf16.msra.mxu1 %v679_v23  ;;  %517 = vmatmul.mubr.f32.vlgmr.msra.gmra.mrb[0].mxu0 %v1251_v29  ;;  %v232_v29 = vld [vmem:[%s1757_s2 + $0x650] sm:$0xff]  ;;  %v687_v46 = vpack.c.bf16 %v104_v39, %v102_v21  ;;  %v827_v23 = vpack.c.bf16 %v244_v13, %v242_v11 }
  0x46   :  { %808 = vmatpush1.bf16.msra.mxu0 %v807_v24  ;;  %682 = vmatprep.subr.bf16.mxu1 %v681_v25  ;;  %v815_v47 = vpack.c.bf16 %v232_v29, %v230_v40  ;;  %v701_v24 = vpack.c.bf16 %v121_v15, %v119_v14  ;;  %v248_v25 = vld [vmem:[%s1757_s2 + $0x6d0] sm:$0xff] }
  0x47   :  { %810 = vmatprep.subr.bf16.mxu0 %v809_v30  ;;  %v251_v30 = vld [vmem:[%s1757_s2 + $0x6e8] sm:$0xff] }
  0x49   :  { %684 = vmatpush1.bf16.msra.mxu1 %v683_v36  ;;  %v703_v36 = vpack.c.bf16 %v120_v20, %v118_v19 }
  0x4a   :  { %812 = vmatpush1.bf16.msra.mxu0 %v811_v37  ;;  %686 = vmatprep.subr.bf16.mxu1 %v685_v38  ;;  %v1526_v37 = vadd.f32 %v23_v33, %v19_v32  ;;  %v1528_v38 = vadd.f32 %v25_v35, %v21_v34 }
  0x4b   :  { %814 = vmatprep.subr.bf16.mxu0 %v813_v41 }
  0x4d   :  { %688 = vmatpush1.bf16.msra.mxu1 %v687_v46 }
  0x4e   :  { %816 = vmatpush1.bf16.msra.mxu0 %v815_v47  ;;  %690 = vmatprep.subr.bf16.mxu1 %v689_v48 }
  0x4f   :  { %818 = vmatprep.subr.bf16.mxu0 %v817_v52 }
  0x51   :  { %692 = vmatpush1.bf16.msra.mxu1 %v691_v58 }
  0x52   :  { %820 = vmatpush1.bf16.msra.mxu0 %v819_v59  ;;  %694 = vmatprep.subr.bf16.mxu1 %v693_v60 }
  0x53   :  { %822 = vmatprep.subr.bf16.mxu0 %v821_v0 }
  0x55   :  { %696 = vmatpush1.bf16.msra.mxu1 %v695_v6 }
  0x56   :  { %824 = vmatpush1.bf16.msra.mxu0 %v823_v7  ;;  %698 = vmatprep.subr.bf16.mxu1 %v697_v8 }
  0x57   :  { %826 = vmatprep.subr.bf16.mxu0 %v825_v12 }
  0x59   :  { %700 = vmatpush1.bf16.msra.mxu1 %v699_v18 }
  0x5a   :  { %9 = vsyncpa [#allocation3], 0  ;;  %828 = vmatpush1.bf16.msra.mxu0 %v827_v23  ;;  %702 = vmatprep.subr.bf16.mxu1 %v701_v24  ;;  %v831_v21 = vpack.c.bf16 %v248_v25, %v246_v22  ;;  %v705_v39 = vpack.c.bf16 %v125_v27, %v123_v26  ;;  %v122_v40 = vld [vmem:[%s1757_s2 + $0x2e0] sm:$0xff]  ;;  %v124_v41 = vld [vmem:[%s1757_s2 + $0x2f0] sm:$0xff]  ;;  %v833_v42 = vpack.c.bf16 %v253_v31, %v251_v30 }
  0x5b   :  { %v250_v29 = vld [vmem:[%s1757_s2 + $0x6e0] sm:$0xff]  ;;  %830 = vmatprep.subr.bf16.mxu0 %v829_v28  ;;  %v252_v43 = vld [vmem:[%s1757_s2 + $0x6f0] sm:$0xff]  ;;  %v127_v44 = vld [vmem:[%s1757_s2 + $0x308] sm:$0xff]  ;;  %v303_v46 = vcombine.high %v1526_v37, %v1526_v37  ;;  %v305_v47 = vcombine.high %v1528_v38, %v1528_v38  ;;  %v707_v50 = vpack.c.bf16 %v124_v41, %v122_v40 }
  0x5c   :  { %v129_v45 = vld [vmem:[%s1757_s2 + $0x318] sm:$0xff]  ;;  %v255_v48 = vld [vmem:[%s1757_s2 + $0x708] sm:$0xff]  ;;  %v835_v51 = vpack.c.bf16 %v252_v43, %v250_v29  ;;  %v126_v53 = vld [vmem:[%s1757_s2 + $0x300] sm:$0xff] }
  0x5d   :  { %v257_v49 = vld [vmem:[%s1757_s2 + $0x718] sm:$0xff]  ;;  %704 = vmatpush1.bf16.msra.mxu1 %v703_v36  ;;  %445 = vmatprep.mubr.f32.mxu1 %v303_v46  ;;  %v709_v52 = vpack.c.bf16 %v129_v45, %v127_v44  ;;  %v128_v54 = vld [vmem:[%s1757_s2 + $0x310] sm:$0xff]  ;;  %v254_v55 = vld [vmem:[%s1757_s2 + $0x700] sm:$0xff] }
  0x5e   :  { %832 = vmatpush1.bf16.msra.mxu0 %v831_v21  ;;  %706 = vmatprep.subr.bf16.mxu1 %v705_v39  ;;  %v837_v56 = vpack.c.bf16 %v257_v49, %v255_v48  ;;  %v256_v57 = vld [vmem:[%s1757_s2 + $0x710] sm:$0xff]  ;;  %v131_v58 = vld [vmem:[%s1757_s2 + $0x328] sm:$0xff]  ;;  %v133_v59 = vld [vmem:[%s1757_s2 + $0x338] sm:$0xff]  ;;  %v711_v62 = vpack.c.bf16 %v128_v54, %v126_v53 }
  0x5f   :  { %834 = vmatprep.subr.bf16.mxu0 %v833_v42  ;;  %587 = vmatprep.mubr.f32.mxu0 %v305_v47  ;;  %v259_v60 = vld [vmem:[%s1757_s2 + $0x728] sm:$0xff]  ;;  %v261_v61 = vld [vmem:[%s1757_s2 + $0x738] sm:$0xff]  ;;  %v839_v63 = vpack.c.bf16 %v256_v57, %v254_v55  ;;  %v713_v0 = vpack.c.bf16 %v133_v59, %v131_v58  ;;  %v130_v1 = vld [vmem:[%s1757_s2 + $0x320] sm:$0xff] }
  0x60   :  { %v132_v2 = vld [vmem:[%s1757_s2 + $0x330] sm:$0xff]  ;;  %v258_v3 = vld [vmem:[%s1757_s2 + $0x720] sm:$0xff]  ;;  %v841_v4 = vpack.c.bf16 %v261_v61, %v259_v60  ;;  %v135_v6 = vld [vmem:[%s1757_s2 + $0x348] sm:$0xff] }
  0x61   :  { %708 = vmatpush1.bf16.msra.mxu1 %v707_v50  ;;  %v260_v5 = vld [vmem:[%s1757_s2 + $0x730] sm:$0xff]  ;;  %v137_v7 = vld [vmem:[%s1757_s2 + $0x358] sm:$0xff]  ;;  %v263_v8 = vld [vmem:[%s1757_s2 + $0x748] sm:$0xff]  ;;  %v715_v10 = vpack.c.bf16 %v132_v2, %v130_v1 }
  0x62   :  { %836 = vmatpush1.bf16.msra.mxu0 %v835_v51  ;;  %710 = vmatprep.subr.bf16.mxu1 %v709_v52  ;;  %v265_v9 = vld [vmem:[%s1757_s2 + $0x758] sm:$0xff]  ;;  %v843_v11 = vpack.c.bf16 %v260_v5, %v258_v3  ;;  %v717_v12 = vpack.c.bf16 %v137_v7, %v135_v6  ;;  %v134_v13 = vld [vmem:[%s1757_s2 + $0x340] sm:$0xff]  ;;  %v136_v14 = vld [vmem:[%s1757_s2 + $0x350] sm:$0xff] }
  0x63   :  { %838 = vmatprep.subr.bf16.mxu0 %v837_v56  ;;  %v262_v15 = vld [vmem:[%s1757_s2 + $0x740] sm:$0xff]  ;;  %v845_v16 = vpack.c.bf16 %v265_v9, %v263_v8  ;;  %v264_v17 = vld [vmem:[%s1757_s2 + $0x750] sm:$0xff]  ;;  %v139_v18 = vld [vmem:[%s1757_s2 + $0x368] sm:$0xff]  ;;  %v719_v23 = vpack.c.bf16 %v136_v14, %v134_v13 }
  0x64   :  { %v141_v19 = vld [vmem:[%s1757_s2 + $0x378] sm:$0xff]  ;;  %v267_v20 = vld [vmem:[%s1757_s2 + $0x768] sm:$0xff]  ;;  %v847_v24 = vpack.c.bf16 %v264_v17, %v262_v15  ;;  %v138_v26 = vld [vmem:[%s1757_s2 + $0x360] sm:$0xff] }
  0x65   :  { %712 = vmatpush1.bf16.msra.mxu1 %v711_v62  ;;  %v269_v22 = vld [vmem:[%s1757_s2 + $0x778] sm:$0xff]  ;;  %v721_v25 = vpack.c.bf16 %v141_v19, %v139_v18  ;;  %v140_v27 = vld [vmem:[%s1757_s2 + $0x370] sm:$0xff]  ;;  %v266_v28 = vld [vmem:[%s1757_s2 + $0x760] sm:$0xff]  ;;  %v288_v18 = vlaneseq }
  0x66   :  { %840 = vmatpush1.bf16.msra.mxu0 %v839_v63  ;;  %714 = vmatprep.subr.bf16.mxu1 %v713_v0  ;;  %v849_v30 = vpack.c.bf16 %v269_v22, %v267_v20  ;;  %v268_v31 = vld [vmem:[%s1757_s2 + $0x770] sm:$0xff]  ;;  %v143_v32 = vld [vmem:[%s1757_s2 + $0x388] sm:$0xff]  ;;  %v145_v33 = vld [vmem:[%s1757_s2 + $0x398] sm:$0xff]  ;;  %v723_v36 = vpack.c.bf16 %v140_v27, %v138_v26 }
  0x67   :  { %842 = vmatprep.subr.bf16.mxu0 %v841_v4  ;;  %v271_v34 = vld [vmem:[%s1757_s2 + $0x788] sm:$0xff]  ;;  %v273_v35 = vld [vmem:[%s1757_s2 + $0x798] sm:$0xff]  ;;  %v851_v21 = vpack.c.bf16 %v268_v31, %v266_v28  ;;  %v725_v39 = vpack.c.bf16 %v145_v33, %v143_v32  ;;  %v142_v40 = vld [vmem:[%s1757_s2 + $0x380] sm:$0xff]  ;;  %v289_v19 = vshrl.u32 %v288_v18, 7 }
  0x68   :  { %v144_v41 = vld [vmem:[%s1757_s2 + $0x390] sm:$0xff]  ;;  %v270_v29 = vld [vmem:[%s1757_s2 + $0x780] sm:$0xff]  ;;  %v853_v42 = vpack.c.bf16 %v273_v35, %v271_v34  ;;  %v147_v44 = vld [vmem:[%s1757_s2 + $0x3a8] sm:$0xff] }
  0x69   :  { %716 = vmatpush1.bf16.msra.mxu1 %v715_v10  ;;  %v272_v43 = vld [vmem:[%s1757_s2 + $0x790] sm:$0xff]  ;;  %v149_v45 = vld [vmem:[%s1757_s2 + $0x3b8] sm:$0xff]  ;;  %v275_v46 = vld [vmem:[%s1757_s2 + $0x7a8] sm:$0xff]  ;;  %v727_v48 = vpack.c.bf16 %v144_v41, %v142_v40  ;;  %v290_v20 = vsub.s32 0, %v289_v19 }
  0x6a   :  { %844 = vmatpush1.bf16.msra.mxu0 %v843_v11  ;;  %718 = vmatprep.subr.bf16.mxu1 %v717_v12  ;;  %v277_v47 = vld [vmem:[%s1757_s2 + $0x7b8] sm:$0xff]  ;;  %v855_v49 = vpack.c.bf16 %v272_v43, %v270_v29  ;;  %v729_v50 = vpack.c.bf16 %v149_v45, %v147_v44  ;;  %v146_v51 = vld [vmem:[%s1757_s2 + $0x3a0] sm:$0xff]  ;;  %v148_v52 = vld [vmem:[%s1757_s2 + $0x3b0] sm:$0xff] }
  0x6b   :  { %846 = vmatprep.subr.bf16.mxu0 %v845_v16  ;;  %v274_v53 = vld [vmem:[%s1757_s2 + $0x7a0] sm:$0xff]  ;;  %v857_v54 = vpack.c.bf16 %v277_v47, %v275_v46  ;;  %v276_v55 = vld [vmem:[%s1757_s2 + $0x7b0] sm:$0xff]  ;;  %v151_v56 = vld [vmem:[%s1757_s2 + $0x3c8] sm:$0xff]  ;;  %v731_v60 = vpack.c.bf16 %v148_v52, %v146_v51 }
  0x6c   :  { %v153_v57 = vld [vmem:[%s1757_s2 + $0x3d8] sm:$0xff]  ;;  %v279_v58 = vld [vmem:[%s1757_s2 + $0x7c8] sm:$0xff]  ;;  %v859_v61 = vpack.c.bf16 %v276_v55, %v274_v53  ;;  %v150_v63 = vld [vmem:[%s1757_s2 + $0x3c0] sm:$0xff] }
  0x6d   :  { %720 = vmatpush1.bf16.msra.mxu1 %v719_v23  ;;  %v281_v59 = vld [vmem:[%s1757_s2 + $0x7d8] sm:$0xff]  ;;  %v733_v62 = vpack.c.bf16 %v153_v57, %v151_v56  ;;  %v152_v0 = vld [vmem:[%s1757_s2 + $0x3d0] sm:$0xff]  ;;  %v278_v1 = vld [vmem:[%s1757_s2 + $0x7c0] sm:$0xff]  ;;  %v294_v23 = vsub.s32 1, %v289_v19 }
  0x6e   :  { %848 = vmatpush1.bf16.msra.mxu0 %v847_v24  ;;  %722 = vmatprep.subr.bf16.mxu1 %v721_v25  ;;  %v861_v2 = vpack.c.bf16 %v281_v59, %v279_v58  ;;  %v280_v3 = vld [vmem:[%s1757_s2 + $0x7d0] sm:$0xff]  ;;  %v155_v4 = vld [vmem:[%s1757_s2 + $0x3e8] sm:$0xff]  ;;  %v157_v5 = vld [vmem:[%s1757_s2 + $0x3f8] sm:$0xff]  ;;  %v735_v8 = vpack.c.bf16 %v152_v0, %v150_v63 }
  0x6f   :  { %850 = vmatprep.subr.bf16.mxu0 %v849_v30  ;;  %v283_v6 = vld [vmem:[%s1757_s2 + $0x7e8] sm:$0xff]  ;;  %v285_v7 = vld [vmem:[%s1757_s2 + $0x7f8] sm:$0xff]  ;;  %v863_v9 = vpack.c.bf16 %v280_v3, %v278_v1  ;;  %v737_v10 = vpack.c.bf16 %v157_v5, %v155_v4  ;;  %v154_v11 = vld [vmem:[%s1757_s2 + $0x3e0] sm:$0xff] }
  0x70   :  { %v156_v12 = vld [vmem:[%s1757_s2 + $0x3f0] sm:$0xff]  ;;  %v865_v13 = vpack.c.bf16 %v285_v7, %v283_v6  ;;  %v282_v14 = vld [vmem:[%s1757_s2 + $0x7e0] sm:$0xff] }
  0x71   :  { %724 = vmatpush1.bf16.msra.mxu1 %v723_v36  ;;  %v284_v15 = vld [vmem:[%s1757_s2 + $0x7f0] sm:$0xff]  ;;  %v739_v16 = vpack.c.bf16 %v156_v12, %v154_v11  ;;  %v286_v22 = vld [vmem:[%s1758_s3] sm:$0x3]  ;;  %s902_s2 = smov [#allocation2]  }
  0x72   :  { %852 = vmatpush1.bf16.msra.mxu0 %v851_v21  ;;  %726 = vmatprep.subr.bf16.mxu1 %v725_v39  ;;  %v867_v17 = vpack.c.bf16 %v284_v15, %v282_v14  ;;  %v291_v24 = vrot.slane %v286_v22, %v290_v20  ;;  %v295_v25 = vrot.slane %v286_v22, %v294_v23  ;;  %s605_s15 = sshll.u32 %s902_s2, 4  ;;  %s606_s15 = int_to_ptr.vmem [resolvable:$true] %s605_s15 }
  0x73   :  { %854 = vmatprep.subr.bf16.mxu0 %v853_v42  ;;  %s878_s16 = scalar_lea.vmem %s606_s15, 128  ;;  %p883_p1 = scmp.lt.s32.totalorder %s606_s15, %s606_s15 }
  0x74   :  { %p879_p0 = scmp.ne.s32.totalorder %s606_s15, %s878_s16  ;;  %p884_p2 = scmp.lt.s32.totalorder %s878_s16, %s878_s16 }
  0x75   :  { %728 = vmatpush1.bf16.msra.mxu1 %v727_v48 }
  0x76   :  { %856 = vmatpush1.bf16.msra.mxu0 %v855_v49  ;;  %730 = vmatprep.subr.bf16.mxu1 %v729_v50  ;;  %p885_p3 = por %p884_p2, %p883_p1 }
  0x77   :  { %858 = vmatprep.subr.bf16.mxu0 %v857_v54 }
  0x78   :  { %p886_p4 = pnand %p885_p3, %p879_p0 }
  0x79   :  { %732 = vmatpush1.bf16.msra.mxu1 %v731_v60 }
  0x7a   :  { %860 = vmatpush1.bf16.msra.mxu0 %v859_v61  ;;  %734 = vmatprep.subr.bf16.mxu1 %v733_v62 }
  0x7b   :  { %862 = vmatprep.subr.bf16.mxu0 %v861_v2 }
  0x7d   :  { %736 = vmatpush1.bf16.msra.mxu1 %v735_v8 }
  0x7e   :  { %864 = vmatpush1.bf16.msra.mxu0 %v863_v9  ;;  %738 = vmatprep.subr.bf16.mxu1 %v737_v10 }
  0x7f   :  { %866 = vmatprep.subr.bf16.mxu0 %v865_v13 }
  0x81   :  { %740 = vmatpush1.bf16.msra.mxu1 %v739_v16 }
  0x82   :  { %868 = vmatpush1.bf16.msra.mxu0 %v867_v17 }
  0x84   :  { %446 = vmatmul.mubr.f32.vlgmr.msra.gmra.mrb[0].mxu1 %v1526_v37 }
  0x85   :  { %588 = vmatmul.mubr.f32.vlgmr.msra.gmra.mrb[0].mxu0 %v1528_v38 }
 0x157   :  { %v447_v26 = vpop.f32.mrb[0].mxu1 }
 0x158   :  { %v869_v27 = vadd.f32 %v447_v26, %v291_v24  ;;  %v589_v28 = vpop.f32.mrb[0].mxu0  ;;  %v449_v30 = vpop.f32.mrb[1].mxu1 }
 0x159   :  { %v871_v31 = vadd.f32 %v449_v30, %v295_v25  ;;  %v591_v32 = vpop.f32.mrb[1].mxu0 }
 0x15a   :  { %v870_v33 = vadd.f32 %v869_v27, %v589_v28 }
 0x15b   :  { %v872_v37 = vadd.f32 %v871_v31, %v591_v32 }
 0x15d   :  { %v596_v38 = vcombine.low %v870_v33, %v872_v37 }
 0x15f   :  { %598 = vst [vmem:[#allocation2] sm:$0xff] %v596_v38 }
 0x160   :  { %889 = shalt.err (!%p886_p4)
}
 0x161   :  { %s890_s18 = scalar_lea.hbm %s1759_s4, 128 }
 0x162   :  { %p891_p5 = scmp.ne.s32.totalorder %s1759_s4, %s890_s18  ;;  %p894_p6 = scmp.lt.u32.totalorder %s890_s18, %s1759_s4 }
 0x164   :  { %p896_p7 = pnand %p894_p6, %p891_p5 }
 0x166   :  { %899 = shalt.err (!%p896_p7)
}
 0x167   :  { %608 = dma.vmem_to_hbm [thread:$0]  %s606_s15, 128, %s1759_s4, [#allocation3]  }
 0x168   :  { %900 = dma.done.wait [#allocation3], 128  }
 0x169   :  { %901 = vsyncadd [#allocation3], 4294967168 }
 0x16a   :  { %612 = vsyncpa [#allocation3], 1 }

// kernel: stacked_attention_forward.4
= control target key start
LH: loop header
LB: loop body
LE: loop exit
PB: predicated region body
PF: predicated region fallthrough
CT: control target
= control target key end

     0   :  { %s1672_s15 = smov 0   ;;  %s1985_s0 = inlined_call_operand.vmem [shape: bf16[4,4,1024], index: 0, kind: input, shape index: {}]   ;;  %s1986_s1 = inlined_call_operand.vmem [shape: f32[4,1,128], index: 1, kind: input, shape index: {}]   ;;  %s1987_s2 = inlined_call_operand.vmem [shape: bf16[1024,128], index: 2, kind: input, shape index: {}]   ;;  %s1988_s3 = inlined_call_operand.vmem [shape: f32[1,128], index: 3, kind: input, shape index: {}]   ;;  %s1989_s4 = inlined_call_operand.vmem [shape: f32[4,1,1024], index: 4, kind: output, shape index: {}]  }
   0x1 LB: > { %s1376_s16 = sadd.s32 4294967295, %s1642_s15   ;;  %p1380_p0 = scmp.ge.s32.totalorder %s1642_s15, 1  ;;  %s1642_s15 = sphi %s1672_s15, %s14_s15  }
   0x2   : > { %p174_p1 = scmp.lt.s32.totalorder %s1642_s15, 3 }
   0x4   : > { %p175_p2 = pnand %p1380_p0, %p174_p1 }
   0x5   : > { %v1556_v0 = vld [vmem:[%s1987_s2 + $0x40] sm:$0xff] (!%p175_p2)   ;;  %v1560_v4 = vld [vmem:[%s1987_s2 + $0x48] sm:$0xff] (!%p175_p2)   ;;  %v1564_v8 = vld [vmem:[%s1987_s2 + $0x50] sm:$0xff] (!%p175_p2)   ;;  %s1381_s25 = sshll.u32 (!%p175_p2), %s1376_s16, 1  ;;  %v365_v30 = vlaneseq (!%p175_p2)  ;;  %v1644_v35 = vmov (!%p175_p2), 1983009808  }
   0x6   : > { %178 = sbr.rel (%p175_p2) target bundleno = 559 (0x22f), region = 36  ;;  %v1557_v1 = vld [vmem:[%s1987_s2 + $0xc0] sm:$0xff] (!%p175_p2)   ;;  %1457 = vmatprep.subr.bf16.mxu0 (!%p175_p2), %v1556_v0  ;;  %v1561_v5 = vld [vmem:[%s1987_s2 + $0xc8] sm:$0xff] (!%p175_p2)   ;;  %v1565_v9 = vld [vmem:[%s1987_s2 + $0xd0] sm:$0xff] (!%p175_p2)   ;;  %p206_p3 = scmp.lt.s32.totalorder (!%p175_p2), %s1381_s25, 3  ;;  %v363_v36 = vunpack.c.l.s4 (!%p175_p2), %v1644_v35  ;;  %vm978_vm0 = vcmask (!%p175_p2), 1043456  }
   0x7   : > { %v1558_v2 = vld [vmem:[%s1987_s2] sm:$0xff] (!%p175_p2)   ;;  %1479 = vmatprep.subr.bf16.mxu1 (!%p175_p2), %v1557_v1  ;;  %v1562_v6 = vld [vmem:[%s1987_s2 + $0x8] sm:$0xff] (!%p175_p2)   ;;  %v1566_v10 = vld [vmem:[%s1987_s2 + $0x10] sm:$0xff] (!%p175_p2)   ;;  %v1792_v37 = vshrl.u32 (!%p175_p2), %v365_v30, 7 }
   0x8   : > { %v1559_v3 = vld [vmem:[%s1987_s2 + $0x80] sm:$0xff] (!%p175_p2)   ;;  %1458 = vmatpush3.bf16.msra.mxu0 (!%p175_p2), %v1558_v2  ;;  %v1563_v7 = vld [vmem:[%s1987_s2 + $0x88] sm:$0xff] (!%p175_p2)   ;;  %v1567_v11 = vld [vmem:[%s1987_s2 + $0x90] sm:$0xff] (!%p175_p2)   ;;  %v364_v41 = vunpack.c.0.s8 (!%p175_p2), %v363_v36 }
   0x9   : > { %1480 = vmatpush3.bf16.msra.mxu1 (!%p175_p2), %v1559_v3  ;;  %1459 = vmatprep.subr.bf16.mxu0 (!%p175_p2), %v1560_v4  ;;  %v1568_v12 = vld [vmem:[%s1987_s2 + $0x58] sm:$0xff] (!%p175_p2)   ;;  %v1572_v16 = vld [vmem:[%s1987_s2 + $0x60] sm:$0xff] (!%p175_p2)   ;;  %v1576_v20 = vld [vmem:[%s1987_s2 + $0x68] sm:$0xff] (!%p175_p2)  }
   0xa   : > { %1481 = vmatprep.subr.bf16.mxu1 (!%p175_p2), %v1561_v5  ;;  %v1569_v13 = vld [vmem:[%s1987_s2 + $0xd8] sm:$0xff] (!%p175_p2)   ;;  %v1573_v17 = vld [vmem:[%s1987_s2 + $0xe0] sm:$0xff] (!%p175_p2)   ;;  %v1577_v21 = vld [vmem:[%s1987_s2 + $0xe8] sm:$0xff] (!%p175_p2)   ;;  %v1805_v43 = vsub.s32 (!%p175_p2), %v364_v41, %v1792_v37 }
   0xb   : > { %v1570_v14 = vld [vmem:[%s1987_s2 + $0x18] sm:$0xff] (!%p175_p2)   ;;  %v1574_v18 = vld [vmem:[%s1987_s2 + $0x20] sm:$0xff] (!%p175_p2)   ;;  %v1578_v22 = vld [vmem:[%s1987_s2 + $0x28] sm:$0xff] (!%p175_p2)  }
   0xc   : > { %1460 = vmatpush3.bf16.msra.mxu0 (!%p175_p2), %v1562_v6  ;;  %v1571_v15 = vld [vmem:[%s1987_s2 + $0x98] sm:$0xff] (!%p175_p2)   ;;  %v1575_v19 = vld [vmem:[%s1987_s2 + $0xa0] sm:$0xff] (!%p175_p2)   ;;  %v1579_v23 = vld [vmem:[%s1987_s2 + $0xa8] sm:$0xff] (!%p175_p2)  }
   0xd   : > { %1482 = vmatpush3.bf16.msra.mxu1 %v1563_v7  ;;  %1461 = vmatprep.subr.bf16.mxu0 %v1564_v8  ;;  %s1991_s25 = smov (!%p206_p3, %s1381_s25), 3  ;;  %v1580_v24 = vld [vmem:[%s1987_s2 + $0x70] sm:$0xff]   ;;  %v1584_v28 = vld [vmem:[%s1987_s2 + $0x78] sm:$0xff]   ;;  %v1590_v38 = vld [vmem:[%s1987_s2 + $0x140] sm:$0xff]  }
   0xe   : > { %1483 = vmatprep.subr.bf16.mxu1 %v1565_v9  ;;  %v1581_v25 = vld [vmem:[%s1987_s2 + $0xf0] sm:$0xff]   ;;  %s1456_s23 = sshll.u32 %s1991_s25, 4  ;;  %v1585_v29 = vld [vmem:[%s1987_s2 + $0xf8] sm:$0xff]   ;;  %v1591_v39 = vld [vmem:[%s1987_s2 + $0x1c0] sm:$0xff]   ;;  %s215_s16 = scalar_lea.vmem %s1986_s1, %s1991_s25 }
   0xf   : > { %v1582_v26 = vld [vmem:[%s1987_s2 + $0x30] sm:$0xff]   ;;  %s1778_s7 = scalar_lea.vmem %s1985_s0, %s1456_s23  ;;  %v1586_v31 = vld [vmem:[%s1987_s2 + $0x38] sm:$0xff]   ;;  %v1592_v46 = vld [vmem:[%s1987_s2 + $0x100] sm:$0xff]   ;;  %s1386_s10 = sshll.u32 %s1991_s25, 3 }
  0x10   : > { %1462 = vmatpush3.bf16.msra.mxu0 %v1566_v10  ;;  %v1583_v27 = vld [vmem:[%s1987_s2 + $0xb0] sm:$0xff]   ;;  %v1587_v32 = vld [vmem:[%s1987_s2 + $0xb8] sm:$0xff]   ;;  %v1787_v33 = vld [vmem:[%s1778_s7] sm:$0xff]  ;;  %s1971_s13 = scalar_lea.vmem %s1989_s4, %s1386_s10 }
  0x11   : > { %1484 = vmatpush3.bf16.msra.mxu1 %v1567_v11  ;;  %1463 = vmatprep.subr.bf16.mxu0 %v1568_v12  ;;  %v1790_v34 = vld [vmem:[%s1778_s7 + $0x10] sm:$0xff]  ;;  %v1593_v47 = vld [vmem:[%s1987_s2 + $0x180] sm:$0xff]   ;;  %v1594_v50 = vld [vmem:[%s1987_s2 + $0x148] sm:$0xff]  }
  0x12   : > { %1485 = vmatprep.subr.bf16.mxu1 %v1569_v13  ;;  %v360_v40 = vcombine.low %v1787_v33, %v1790_v34  ;;  %v361_v42 = vcombine.high %v1787_v33, %v1790_v34  ;;  %v1595_v51 = vld [vmem:[%s1987_s2 + $0x1c8] sm:$0xff]   ;;  %v1598_v54 = vld [vmem:[%s1987_s2 + $0x150] sm:$0xff]   ;;  %v1602_v58 = vld [vmem:[%s1987_s2 + $0x158] sm:$0xff]  }
  0x13   : > { %v1596_v52 = vld [vmem:[%s1987_s2 + $0x108] sm:$0xff]   ;;  %v1599_v55 = vld [vmem:[%s1987_s2 + $0x1d0] sm:$0xff]   ;;  %v1603_v59 = vld [vmem:[%s1987_s2 + $0x1d8] sm:$0xff]  }
  0x14   : > { %1464 = vmatpush3.bf16.msra.mxu0 %v1570_v14  ;;  %v368_v44 = vrot.slane %v360_v40, %v1805_v43  ;;  %v375_v45 = vrot.slane %v361_v42, %v1805_v43  ;;  %v1597_v53 = vld [vmem:[%s1987_s2 + $0x188] sm:$0xff]   ;;  %v1600_v56 = vld [vmem:[%s1987_s2 + $0x110] sm:$0xff]   ;;  %v1604_v60 = vld [vmem:[%s1987_s2 + $0x118] sm:$0xff]  }
  0x15   : > { %1486 = vmatpush3.bf16.msra.mxu1 %v1571_v15  ;;  %1465 = vmatprep.subr.bf16.mxu0 %v1572_v16  ;;  %v1601_v57 = vld [vmem:[%s1987_s2 + $0x190] sm:$0xff]   ;;  %v1605_v61 = vld [vmem:[%s1987_s2 + $0x198] sm:$0xff]   ;;  %v1606_v62 = vld [vmem:[%s1987_s2 + $0x160] sm:$0xff]  }
  0x16   : > { %1487 = vmatprep.subr.bf16.mxu1 %v1573_v17  ;;  %v376_v48 = vcombine.high %v368_v44, %v368_v44  ;;  %v377_v49 = vcombine.high %v375_v45, %v375_v45  ;;  %v1607_v63 = vld [vmem:[%s1987_s2 + $0x1e0] sm:$0xff]   ;;  %v1610_v2 = vld [vmem:[%s1987_s2 + $0x168] sm:$0xff]   ;;  %v1614_v6 = vld [vmem:[%s1987_s2 + $0x170] sm:$0xff]  }
  0x17   : > { %v1608_v0 = vld [vmem:[%s1987_s2 + $0x120] sm:$0xff]   ;;  %v1611_v3 = vld [vmem:[%s1987_s2 + $0x1e8] sm:$0xff]   ;;  %v1615_v7 = vld [vmem:[%s1987_s2 + $0x1f0] sm:$0xff]  }
  0x18   : > { %1466 = vmatpush3.bf16.msra.mxu0 %v1574_v18  ;;  %820 = vmatprep.mubr.bf16.mxu0 %v376_v48  ;;  %v1609_v1 = vld [vmem:[%s1987_s2 + $0x1a0] sm:$0xff]   ;;  %v1612_v4 = vld [vmem:[%s1987_s2 + $0x128] sm:$0xff]   ;;  %v1616_v8 = vld [vmem:[%s1987_s2 + $0x130] sm:$0xff]  }
  0x19   : > { %1488 = vmatpush3.bf16.msra.mxu1 %v1575_v19  ;;  %1467 = vmatprep.subr.bf16.mxu0 %v1576_v20  ;;  %v1613_v5 = vld [vmem:[%s1987_s2 + $0x1a8] sm:$0xff]   ;;  %v1617_v9 = vld [vmem:[%s1987_s2 + $0x1b0] sm:$0xff]   ;;  %v1891_v11 = vld [vmem:[%s1778_s7 + $0x18] sm:$0xff] }
  0x1a   : > { %1489 = vmatprep.subr.bf16.mxu1 %v1577_v21  ;;  %860 = vmatprep.mubr.bf16.mxu1 %v377_v49  ;;  %v1888_v10 = vld [vmem:[%s1778_s7 + $0x8] sm:$0xff]  ;;  %v1618_v12 = vld [vmem:[%s1987_s2 + $0x178] sm:$0xff]   ;;  %v1452_v49 = vld [vmem:[%s215_s16 + $0x1] ss:$0 sm:$0xff] }
  0x1b   : > { %v1619_v13 = vld [vmem:[%s1987_s2 + $0x1f8] sm:$0xff]   ;;  %v378_v14 = vcombine.low %v1888_v10, %v1891_v11  ;;  %v379_v15 = vcombine.high %v1888_v10, %v1891_v11 }
  0x1c   : > { %1468 = vmatpush3.bf16.msra.mxu0 %v1578_v22  ;;  %v1620_v17 = vld [vmem:[%s1987_s2 + $0x138] sm:$0xff]  }
  0x1d   : > { %1490 = vmatpush3.bf16.msra.mxu1 %v1579_v23  ;;  %1469 = vmatprep.subr.bf16.mxu0 %v1580_v24  ;;  %v386_v16 = vrot.slane %v378_v14, %v1805_v43  ;;  %v1621_v18 = vld [vmem:[%s1987_s2 + $0x1b8] sm:$0xff]   ;;  %v393_v19 = vrot.slane %v379_v15, %v1805_v43 }
  0x1e   : > { %1491 = vmatprep.subr.bf16.mxu1 %v1581_v25 }
  0x1f   : > { %v394_v20 = vcombine.high %v386_v16, %v386_v16  ;;  %v395_v21 = vcombine.high %v393_v19, %v393_v19 }
  0x20   : > { %1470 = vmatpush3.bf16.msra.mxu0 %v1582_v26 }
  0x21   : > { %1492 = vmatpush3.bf16.msra.mxu1 %v1583_v27  ;;  %1471 = vmatprep.subr.bf16.mxu0 %v1584_v28 }
  0x22   : > { %1493 = vmatprep.subr.bf16.mxu1 %v1585_v29 }
  0x24   : > { %1472 = vmatpush3.bf16.msra.mxu0 %v1586_v31 }
  0x25   : > { %1494 = vmatpush3.bf16.msra.mxu1 %v1587_v32  ;;  %1501 = vmatprep.subr.bf16.mxu0 %v1590_v38 }
  0x26   : > { %1523 = vmatprep.subr.bf16.mxu1 %v1591_v39 }
  0x27   : > { %821 = vmatmul.mubr.bf16.vlgmr.msra.gmra.mrb[0].mxu0 %v368_v44 }
  0x28   : > { %861 = vmatmul.mubr.bf16.vlgmr.msra.gmra.mrb[0].mxu1 %v375_v45  ;;  %1502 = vmatpush3.bf16.msra.mxu0 %v1592_v46 }
  0x29   : > { %1524 = vmatpush3.bf16.msra.mxu1 %v1593_v47  ;;  %1503 = vmatprep.subr.bf16.mxu0 %v1594_v50  ;;  %v1451_v47 = vld [vmem:[%s215_s16] ss:$0 sm:$0xff] }
  0x2a   : > { %1525 = vmatprep.subr.bf16.mxu1 %v1595_v51  ;;  %900 = vmatprep.mubr.bf16.mxu0 %v394_v20 }
  0x2b   : > { %940 = vmatprep.mubr.bf16.mxu1 %v395_v21 }
  0x2c   : > { %1504 = vmatpush3.bf16.msra.mxu0 %v1596_v52 }
  0x2d   : > { %1526 = vmatpush3.bf16.msra.mxu1 %v1597_v53  ;;  %1505 = vmatprep.subr.bf16.mxu0 %v1598_v54  ;;  %v1453_v53 = vld [vmem:[%s1988_s3] ss:$0 sm:$0xff] }
  0x2e   : > { %1527 = vmatprep.subr.bf16.mxu1 %v1599_v55 }
  0x30   : > { %1506 = vmatpush3.bf16.msra.mxu0 %v1600_v56 }
  0x31   : > { %1528 = vmatpush3.bf16.msra.mxu1 %v1601_v57  ;;  %1507 = vmatprep.subr.bf16.mxu0 %v1602_v58 }
  0x32   : > { %1529 = vmatprep.subr.bf16.mxu1 %v1603_v59 }
  0x34   : > { %1508 = vmatpush3.bf16.msra.mxu0 %v1604_v60 }
  0x35   : > { %1530 = vmatpush3.bf16.msra.mxu1 %v1605_v61  ;;  %1509 = vmatprep.subr.bf16.mxu0 %v1606_v62 }
  0x36   : > { %1531 = vmatprep.subr.bf16.mxu1 %v1607_v63 }
  0x38   : > { %1510 = vmatpush3.bf16.msra.mxu0 %v1608_v0 }
  0x39   : > { %1532 = vmatpush3.bf16.msra.mxu1 %v1609_v1  ;;  %1511 = vmatprep.subr.bf16.mxu0 %v1610_v2 }
  0x3a   : > { %1533 = vmatprep.subr.bf16.mxu1 %v1611_v3 }
  0x3c   : > { %1512 = vmatpush3.bf16.msra.mxu0 %v1612_v4 }
  0x3d   : > { %1534 = vmatpush3.bf16.msra.mxu1 %v1613_v5  ;;  %1513 = vmatprep.subr.bf16.mxu0 %v1614_v6 }
  0x3e   : > { %1535 = vmatprep.subr.bf16.mxu1 %v1615_v7 }
  0x40   : > { %1514 = vmatpush3.bf16.msra.mxu0 %v1616_v8 }
  0x41   : > { %1536 = vmatpush3.bf16.msra.mxu1 %v1617_v9  ;;  %1515 = vmatprep.subr.bf16.mxu0 %v1618_v12 }
  0x42   : > { %1537 = vmatprep.subr.bf16.mxu1 %v1619_v13 }
  0x44   : > { %1516 = vmatpush3.bf16.msra.mxu0 %v1620_v17 }
  0x45   : > { %1538 = vmatpush3.bf16.msra.mxu1 %v1621_v18 }
  0x47   : > { %901 = vmatmul.mubr.bf16.vlgmr.msra.gmra.mrb[4].mxu0 %v386_v16 }
  0x48   : > { %941 = vmatmul.mubr.bf16.vlgmr.msra.gmra.mrb[4].mxu1 %v393_v19 }
  0xfa   : > { %v1473_v22 = vpop.f32.mrb[0].mxu0 }
  0xfb   : > { %v1495_v23 = vpop.f32.mrb[0].mxu1  ;;  %v1474_v24 = vpop.f32.mrb[1].mxu0 }
  0xfc   : > { %v1496_v25 = vpop.f32.mrb[1].mxu1  ;;  %v1475_v26 = vadd.f32 %v1474_v24, %v1473_v22  ;;  %v1476_v28 = vpop.f32.mrb[2].mxu0 }
  0xfd   : > { %v1497_v27 = vadd.f32 %v1496_v25, %v1495_v23  ;;  %v1498_v29 = vpop.f32.mrb[2].mxu1  ;;  %v1477_v30 = vpop.f32.mrb[3].mxu0 }
  0xfe   : > { %v1499_v31 = vpop.f32.mrb[3].mxu1 }
  0xff   : > { %v863_v32 = vadd.f32 %v1497_v27, %v1475_v26 }
 0x11a   : > { %v1517_v35 = vpop.f32.mrb[4].mxu0 }
 0x11b   : > { %v1539_v36 = vpop.f32.mrb[4].mxu1  ;;  %v1518_v38 = vpop.f32.mrb[5].mxu0 }
 0x11c   : > { %v1540_v39 = vpop.f32.mrb[5].mxu1  ;;  %v1519_v40 = vadd.f32 %v1518_v38, %v1517_v35  ;;  %v1520_v42 = vpop.f32.mrb[6].mxu0  ;;  %v1645_v35 = vmov 839922192  }
 0x11d   : > { %v1541_v41 = vadd.f32 %v1540_v39, %v1539_v36  ;;  %v1542_v43 = vpop.f32.mrb[6].mxu1  ;;  %v1521_v44 = vpop.f32.mrb[7].mxu0  ;;  %v1034_v36 = vunpack.c.l.s4 %v1645_v35 }
 0x11e   : > { %v1543_v45 = vpop.f32.mrb[7].mxu1  ;;  %v903_v46 = vadd.f32 %v1519_v40, %v863_v32  ;;  %v1646_v40 = vmov 1966171168   ;;  %v1023_v44 = vunpack.c.l.bf16 %v1787_v33 }
 0x11f   : > { %v1035_v39 = vunpack.c.0.s8 %v1034_v36  ;;  %v1024_v45 = vunpack.c.h.bf16 %v1787_v33  ;;  %v1029_v33 = vunpack.c.l.bf16 %v1891_v11 }
 0x120   : > { %v943_v48 = vadd.f32 %v1541_v41, %v903_v46  ;;  %v1214_v41 = vunpack.c.l.s4 %v1646_v40  ;;  %v1025_v46 = vunpack.c.l.bf16 %v1888_v10 }
 0x121   : > { %v1925_v42 = vsub.s32 %v1035_v39, %v1792_v37 }
 0x122   : > { %v949_v50 = vcombine.high %v943_v48, %v943_v48  ;;  %v965_v51 = vadd.f32 %v1451_v47, %v943_v48  ;;  %v1026_v47 = vunpack.c.h.bf16 %v1888_v10 }
 0x124   : > { %v966_v52 = vadd.f32 %v1452_v49, %v949_v50  ;;  %1624 = vtanh.f32 %v965_v51  ;;  %v1215_v49 = vunpack.c.0.s8 %v1214_v41 }
 0x126   : > { %1626 = vtanh.f32 %v966_v52  ;;  %v1027_v52 = vunpack.c.l.bf16 %v1790_v34 }
 0x12e   : > { %v1625_v54 = vpop.eup %1624 }
 0x12f   : > { %v976_v55 = vmul.f32 %v1625_v54, %v1453_v53 }
 0x130   : > { %v1627_v56 = vpop.eup %1626 }
 0x131   : > { %v979_v57 = vsel %vm978_vm0, %v976_v55, 0.0  ;;  %v977_v58 = vmul.f32 %v1627_v56, %v1453_v53 }
 0x132   : > { %980 = vadd.xlane.f32.xlu0 %v979_v57  ;;  %v1028_v57 = vunpack.c.h.bf16 %v1790_v34 }
 0x133   : > { %v982_v59 = vsel %vm978_vm0, %v977_v58, 0.0  ;;  %v1935_v58 = vsub.s32 %v1215_v49, %v1792_v37 }
 0x136   : > { %983 = vadd.xlane.f32.xlu0 %v982_v59 }
 0x1bf   : > { %v981_v60 = vpop.xlane.xlu0 %980 }
 0x1c0   : > { %v985_v61 = vsel %vm978_vm0, %v981_v60, -inf }
 0x1c1   : > { %v986_v62 = vrot.slane %v985_v61, 4 }
 0x1c3   : > { %v987_v63 = vmax.f32 %v985_v61, %v986_v62  ;;  %v984_v0 = vpop.xlane.xlu0 %983 }
 0x1c4   : > { %v992_v1 = vsel %vm978_vm0, %v984_v0, -inf }
 0x1c5   : > { %v988_v2 = vrot.slane %v987_v63, 2  ;;  %v993_v3 = vrot.slane %v992_v1, 4 }
 0x1c7   : > { %v989_v4 = vmax.f32 %v987_v63, %v988_v2  ;;  %v994_v5 = vmax.f32 %v992_v1, %v993_v3 }
 0x1c9   : > { %v990_v6 = vrot.slane %v989_v4, 1  ;;  %v995_v7 = vrot.slane %v994_v5, 2 }
 0x1cb   : > { %v991_v8 = vmax.f32 %v989_v4, %v990_v6  ;;  %v996_v9 = vmax.f32 %v994_v5, %v995_v7 }
 0x1cd   : > { %v999_v12 = vsub.f32 %v981_v60, %v991_v8  ;;  %v997_v13 = vrot.slane %v996_v9, 1 }
 0x1cf   : > { %v1001_v14 = vmul.f32 1.442695, %v999_v12  ;;  %v998_v15 = vmax.f32 %v996_v9, %v997_v13 }
 0x1d1   : > { %1628 = vpow2.f32 %v1001_v14  ;;  %v1000_v16 = vsub.f32 %v984_v0, %v998_v15 }
 0x1d3   : > { %v1003_v17 = vmul.f32 1.442695, %v1000_v16 }
 0x1d5   : > { %1630 = vpow2.f32 %v1003_v17 }
 0x1db   : > { %v1629_v18 = vpop.eup %1628 }
 0x1dc   : > { %v1005_v19 = vsel %vm978_vm0, %v1629_v18, 0.0 }
 0x1dd   : > { %v1006_v20 = vrot.slane %v1005_v19, 4 }
 0x1df   : > { %v1631_v21 = vpop.eup %1630  ;;  %v1007_v22 = vadd.f32 %v1006_v20, %v1005_v19 }
 0x1e0   : > { %v1012_v23 = vsel %vm978_vm0, %v1631_v21, 0.0 }
 0x1e1   : > { %v1008_v24 = vrot.slane %v1007_v22, 2  ;;  %v1013_v25 = vrot.slane %v1012_v23, 4 }
 0x1e3   : > { %v1009_v26 = vadd.f32 %v1008_v24, %v1007_v22  ;;  %v1014_v27 = vadd.f32 %v1013_v25, %v1012_v23 }
 0x1e5   : > { %v1010_v28 = vrot.slane %v1009_v26, 1  ;;  %v1015_v29 = vrot.slane %v1014_v27, 2 }
 0x1e7   : > { %v1011_v30 = vadd.f32 %v1010_v28, %v1009_v26  ;;  %v1016_v31 = vadd.f32 %v1015_v29, %v1014_v27 }
 0x1e9   : > { %1632 = vrcp.f32 %v1011_v30  ;;  %v1017_v32 = vrot.slane %v1016_v31, 1 }
 0x1eb   : > { %v1018_v38 = vadd.f32 %v1017_v32, %v1016_v31 }
 0x1ed   : > { %1634 = vrcp.f32 %v1018_v38 }
 0x1f3   : > { %v1633_v43 = vpop.eup %1632 }
 0x1f4   : > { %v1021_v48 = vmul.f32 %v1633_v43, %v1629_v18 }
 0x1f6   : > { %v1039_v50 = vrot.slane %v1021_v48, %v1925_v42  ;;  %v1030_v48 = vunpack.c.h.bf16 %v1891_v11 }
 0x1f7   : > { %v1635_v51 = vpop.eup %1634 }
 0x1f8   : > { %v1049_v53 = vmul.f32 %v1039_v50, %v1023_v44  ;;  %v1050_v54 = vmul.f32 %v1039_v50, %v1024_v45  ;;  %v1051_v55 = vmul.f32 %v1039_v50, %v1025_v46  ;;  %v1052_v56 = vmul.f32 %v1039_v50, %v1026_v47 }
 0x1f9   : > { %v1022_v59 = vmul.f32 %v1635_v51, %v1631_v21 }
 0x1fa   : > { %v1065_v10 = vcombine.high %v1049_v53, %v1049_v53  ;;  %v1066_v60 = vcombine.high %v1050_v54, %v1050_v54  ;;  %v1067_v61 = vcombine.high %v1051_v55, %v1051_v55  ;;  %v1068_v62 = vcombine.high %v1052_v56, %v1052_v56 }
 0x1fb   : > { %v1081_v63 = vsel %vm978_vm0, %v1049_v53, 0.0  ;;  %v1095_v0 = vsel %vm978_vm0, %v1050_v54, 0.0  ;;  %v1109_v1 = vsel %vm978_vm0, %v1051_v55, 0.0  ;;  %v1123_v2 = vsel %vm978_vm0, %v1052_v56, 0.0 }
 0x1fc   : > { %v1082_v3 = vrot.slane %v1081_v63, 4  ;;  %v1088_v4 = vsel %vm978_vm0, %v1065_v10, 0.0  ;;  %v1096_v37 = vrot.slane %v1095_v0, 4  ;;  %v1102_v5 = vsel %vm978_vm0, %v1066_v60, 0.0 }
 0x1fd   : > { %v1089_v6 = vrot.slane %v1088_v4, 4  ;;  %v1103_v7 = vrot.slane %v1102_v5, 4  ;;  %v1110_v8 = vrot.slane %v1109_v1, 4  ;;  %v1116_v9 = vsel %vm978_vm0, %v1067_v61, 0.0 }
 0x1fe   : > { %v1083_v12 = vadd.f32 %v1082_v3, %v1081_v63  ;;  %v1097_v13 = vadd.f32 %v1096_v37, %v1095_v0  ;;  %v1117_v14 = vrot.slane %v1116_v9, 4  ;;  %v1124_v15 = vrot.slane %v1123_v2, 4 }
 0x1ff   : > { %v1090_v16 = vadd.f32 %v1089_v6, %v1088_v4  ;;  %v1104_v17 = vadd.f32 %v1103_v7, %v1102_v5  ;;  %v1111_v18 = vadd.f32 %v1110_v8, %v1109_v1  ;;  %v1130_v19 = vsel %vm978_vm0, %v1068_v62, 0.0 }
 0x200   : > { %v1084_v20 = vrot.slane %v1083_v12, 2  ;;  %v1098_v21 = vrot.slane %v1097_v13, 2  ;;  %v1118_v22 = vadd.f32 %v1117_v14, %v1116_v9  ;;  %v1125_v23 = vadd.f32 %v1124_v15, %v1123_v2 }
 0x201   : > { %v1091_v24 = vrot.slane %v1090_v16, 2  ;;  %v1105_v25 = vrot.slane %v1104_v17, 2  ;;  %v1112_v26 = vrot.slane %v1111_v18, 2  ;;  %v1131_v27 = vrot.slane %v1130_v19, 4 }
 0x202   : > { %v1085_v28 = vadd.f32 %v1084_v20, %v1083_v12  ;;  %v1099_v29 = vadd.f32 %v1098_v21, %v1097_v13  ;;  %v1119_v30 = vrot.slane %v1118_v22, 2  ;;  %v1126_v31 = vrot.slane %v1125_v23, 2 }
 0x203   : > { %v1092_v32 = vadd.f32 %v1091_v24, %v1090_v16  ;;  %v1106_v35 = vadd.f32 %v1105_v25, %v1104_v17  ;;  %v1113_v36 = vadd.f32 %v1112_v26, %v1111_v18  ;;  %v1132_v38 = vadd.f32 %v1131_v27, %v1130_v19 }
 0x204   : > { %v1086_v39 = vrot.slane %v1085_v28, 1  ;;  %v1100_v40 = vrot.slane %v1099_v29, 1  ;;  %v1120_v41 = vadd.f32 %v1119_v30, %v1118_v22  ;;  %v1127_v43 = vadd.f32 %v1126_v31, %v1125_v23 }
 0x205   : > { %v1093_v44 = vrot.slane %v1092_v32, 1  ;;  %v1107_v45 = vrot.slane %v1106_v35, 1  ;;  %v1114_v46 = vrot.slane %v1113_v36, 1  ;;  %v1133_v47 = vrot.slane %v1132_v38, 2 }
 0x206   : > { %v1087_v49 = vadd.f32 %v1086_v39, %v1085_v28  ;;  %v1121_v50 = vrot.slane %v1120_v41, 1  ;;  %v1128_v51 = vrot.slane %v1127_v43, 1  ;;  %v1101_v54 = vadd.f32 %v1100_v40, %v1099_v29 }
 0x207   : > { %v1094_v53 = vadd.f32 %v1093_v44, %v1092_v32  ;;  %v1108_v55 = vadd.f32 %v1107_v45, %v1106_v35  ;;  %v1134_v56 = vadd.f32 %v1133_v47, %v1132_v38  ;;  %v1115_v10 = vadd.f32 %v1114_v46, %v1113_v36 }
 0x208   : > { %v1122_v60 = vadd.f32 %v1121_v50, %v1120_v41  ;;  %v1046_v61 = vrot.slane %v1022_v59, %v1925_v42  ;;  %v1129_v62 = vadd.f32 %v1128_v51, %v1127_v43 }
 0x209   : > { %v1135_v63 = vrot.slane %v1134_v56, 1  ;;  %v1209_v0 = vcombine.low %v1087_v49, %v1094_v53  ;;  %v1210_v1 = vcombine.low %v1101_v54, %v1108_v55 }
 0x20a   : > { %v1211_v2 = vcombine.low %v1115_v10, %v1122_v60  ;;  %v1053_v3 = vmul.f32 %v1046_v61, %v1027_v52  ;;  %v1054_v4 = vmul.f32 %v1046_v61, %v1028_v57  ;;  %v1055_v37 = vmul.f32 %v1046_v61, %v1029_v33 }
 0x20b   : > { %v1136_v5 = vadd.f32 %v1135_v63, %v1134_v56  ;;  %v1219_v6 = vrot.slane %v1209_v0, %v1935_v58  ;;  %v1226_v7 = vrot.slane %v1210_v1, %v1935_v58  ;;  %v1056_v42 = vmul.f32 %v1046_v61, %v1030_v48 }
 0x20c   : > { %v1233_v59 = vrot.slane %v1211_v2, %v1935_v58  ;;  %v1069_v8 = vcombine.high %v1053_v3, %v1053_v3  ;;  %v1070_v9 = vcombine.high %v1054_v4, %v1054_v4  ;;  %v1071_v12 = vcombine.high %v1055_v37, %v1055_v37 }
 0x20d   : > { %v1212_v13 = vcombine.low %v1129_v62, %v1136_v5  ;;  %v1241_v52 = vcombine.low %v1219_v6, %v1226_v7  ;;  %v1072_v14 = vcombine.high %v1056_v42, %v1056_v42  ;;  %v1137_v34 = vsel %vm978_vm0, %v1053_v3, 0.0 }
 0x20e   : > { %v1138_v57 = vrot.slane %v1137_v34, 4  ;;  %v1144_v11 = vsel %vm978_vm0, %v1069_v8, 0.0  ;;  %v1151_v33 = vsel %vm978_vm0, %v1054_v4, 0.0  ;;  %v1158_v15 = vsel %vm978_vm0, %v1070_v9, 0.0 }
 0x20f   : > { %v1240_v16 = vrot.slane %v1212_v13, %v1935_v58  ;;  %v1249_v17 = vrot.slane %v1241_v52, %v1935_v58  ;;  %v1145_v18 = vrot.slane %v1144_v11, 4  ;;  %v1152_v19 = vrot.slane %v1151_v33, 4 }
 0x210   : > { %v1139_v20 = vadd.f32 %v1138_v57, %v1137_v34  ;;  %v1159_v21 = vrot.slane %v1158_v15, 4  ;;  %v1165_v22 = vsel %vm978_vm0, %v1055_v37, 0.0  ;;  %v1172_v23 = vsel %vm978_vm0, %v1071_v12, 0.0 }
 0x211   : > { %v1242_v24 = vcombine.low %v1233_v59, %v1240_v16  ;;  %v1146_v25 = vadd.f32 %v1145_v18, %v1144_v11  ;;  %v1153_v26 = vadd.f32 %v1152_v19, %v1151_v33  ;;  %v1166_v27 = vrot.slane %v1165_v22, 4 }
 0x212   : > { %v1140_v28 = vrot.slane %v1139_v20, 2  ;;  %v1160_v29 = vadd.f32 %v1159_v21, %v1158_v15  ;;  %v1173_v30 = vrot.slane %v1172_v23, 4  ;;  %v1179_v31 = vsel %vm978_vm0, %v1056_v42, 0.0 }
 0x213   : > { %v1256_v32 = vrot.slane %v1242_v24, %v1935_v58  ;;  %v1147_v35 = vrot.slane %v1146_v25, 2  ;;  %v1154_v36 = vrot.slane %v1153_v26, 2  ;;  %v1167_v38 = vadd.f32 %v1166_v27, %v1165_v22 }
 0x214   : > { %v1141_v39 = vadd.f32 %v1140_v28, %v1139_v20  ;;  %v1161_v40 = vrot.slane %v1160_v29, 2  ;;  %v1174_v41 = vadd.f32 %v1173_v30, %v1172_v23  ;;  %v1180_v43 = vrot.slane %v1179_v31, 4 }
 0x215   : > { %v1257_v44 = vcombine.low %v1249_v17, %v1256_v32  ;;  %v1148_v45 = vadd.f32 %v1147_v35, %v1146_v25  ;;  %v1155_v46 = vadd.f32 %v1154_v36, %v1153_v26  ;;  %v1168_v47 = vrot.slane %v1167_v38, 2 }
 0x216   : > { %v1142_v48 = vrot.slane %v1141_v39, 1  ;;  %v1162_v49 = vadd.f32 %v1161_v40, %v1160_v29  ;;  %v1175_v50 = vrot.slane %v1174_v41, 2  ;;  %v1181_v51 = vadd.f32 %v1180_v43, %v1179_v31 }
 0x217   : > { %1309 = vst [vmem:[%s1971_s13] sm:$0xff] %v1257_v44  ;;  %v1149_v53 = vrot.slane %v1148_v45, 1  ;;  %v1156_v54 = vrot.slane %v1155_v46, 1  ;;  %v1169_v55 = vadd.f32 %v1168_v47, %v1167_v38  ;;  %v1186_v56 = vsel %vm978_vm0, %v1072_v14, 0.0 }
 0x218   : > { %v1163_v10 = vrot.slane %v1162_v49, 1  ;;  %v1176_v60 = vadd.f32 %v1175_v50, %v1174_v41  ;;  %v1182_v61 = vrot.slane %v1181_v51, 2  ;;  %v1187_v63 = vrot.slane %v1186_v56, 4 }
 0x219   : > { %v1150_v62 = vadd.f32 %v1149_v53, %v1148_v45  ;;  %v1143_v0 = vadd.f32 %v1142_v48, %v1141_v39  ;;  %v1157_v3 = vadd.f32 %v1156_v54, %v1155_v46  ;;  %v1170_v4 = vrot.slane %v1169_v55, 1 }
 0x21a   : > { %v1164_v1 = vadd.f32 %v1163_v10, %v1162_v49  ;;  %v1177_v2 = vrot.slane %v1176_v60, 1  ;;  %v1183_v37 = vadd.f32 %v1182_v61, %v1181_v51  ;;  %v1188_v5 = vadd.f32 %v1187_v63, %v1186_v56 }
 0x21b   : > { %v1258_v42 = vcombine.low %v1143_v0, %v1150_v62  ;;  %v1171_v8 = vadd.f32 %v1170_v4, %v1169_v55 }
 0x21c   : > { %v1178_v6 = vadd.f32 %v1177_v2, %v1176_v60  ;;  %v1189_v7 = vrot.slane %v1188_v5, 2  ;;  %v1259_v59 = vcombine.low %v1157_v3, %v1164_v1  ;;  %v1184_v9 = vrot.slane %v1183_v37, 1 }
 0x21d   : > { %v1268_v14 = vrot.slane %v1258_v42, %v1935_v58 }
 0x21e   : > { %v1190_v12 = vadd.f32 %v1189_v7, %v1188_v5  ;;  %v1260_v52 = vcombine.low %v1171_v8, %v1178_v6  ;;  %v1275_v34 = vrot.slane %v1259_v59, %v1935_v58  ;;  %v1185_v57 = vadd.f32 %v1184_v9, %v1183_v37 }
 0x220   : > { %v1191_v13 = vrot.slane %v1190_v12, 1  ;;  %v1282_v15 = vrot.slane %v1260_v52, %v1935_v58  ;;  %v1290_v16 = vcombine.low %v1268_v14, %v1275_v34 }
 0x222   : > { %v1192_v11 = vadd.f32 %v1191_v13, %v1190_v12  ;;  %v1298_v19 = vrot.slane %v1290_v16, %v1935_v58 }
 0x224   : > { %v1261_v33 = vcombine.low %v1185_v57, %v1192_v11 }
 0x226   : > { %v1289_v17 = vrot.slane %v1261_v33, %v1935_v58 }
 0x228   : > { %v1291_v18 = vcombine.low %v1282_v15, %v1289_v17 }
 0x22a   : > { %v1305_v20 = vrot.slane %v1291_v18, %v1935_v58 }
 0x22c   : > { %v1306_v21 = vcombine.low %v1298_v19, %v1305_v20 }
 0x22e   : > { %1310 = vst [vmem:[%s1971_s13 + $0x8] sm:$0xff] %v1306_v21 }
 0x22f PF: > { %s14_s15 = sadd.s32 1, %s1642_s15  }
 0x230   : > { %p11_p4 = scmp.ge.s32.totalorder %s14_s15, 4  }
 0x232   :  { %13 = sbr.rel (!%p11_p4) target bundleno = 1 (0x1), region = 69 }

</bundles_post_ra>
